<compile_context>
chip_gen: v7x
topology: tpu7x:2x2x1
jax: 0.10.0
libtpu: 0.0.40
codegen_flags: <defaults>
</compile_context>

<pallas_src>
import jax
import jax.numpy as jnp
from jax.experimental import pallas as pl
from jax.experimental.pallas import tpu as pltpu  # noqa: F401  (TPU backend assumed)

# ---- model config (consistent with the module's __init__) ----
VOCAB = 50
SEQ = 8
D_EMBED = 32
NUM_HEADS = 4
D_K = D_EMBED // NUM_HEADS            # d_k = d_v = d_embed // num_heads
D_FF = 4 * D_EMBED
NUM_LAYERS = 2
BATCH = 2
LN_EPS = 1e-5

N_TOK = BATCH * SEQ                   # flattened rows processed by the kernel (16)
HN = NUM_HEADS * N_TOK                # all-heads score width (64)
VOCAB_PAD = 128                       # lane-dense logits store, sliced back to VOCAB
VOCAB_EMB = 64                        # sublane-aligned one-hot / embedding pad

assert SEQ & (SEQ - 1) == 0 and N_TOK & (N_TOK - 1) == 0 and D_K & (D_K - 1) == 0
SEQ_SH = SEQ.bit_length() - 1         # 3
DK_SH = D_K.bit_length() - 1          # 3
NTOK_SH = N_TOK.bit_length() - 1      # 4

# ---- single-slab parameter layout (rows x 128 lanes, f32, one DMA) ----
SLAB_LANES = 128
OFF_WQKV = 0                          # (D_EMBED, 3*D_EMBED) fused QKV, Wq pre-scaled
OFF_W1 = OFF_WQKV + D_EMBED           # (D_EMBED, D_FF)
OFF_W2 = OFF_W1 + D_EMBED             # (D_FF, D_EMBED)
OFF_LN = OFF_W2 + D_FF                # rows: g1, b1, g2, b2 (then padding)
LAYER_ROWS = OFF_LN + 8               # 200 rows per layer (8-row aligned)
EMB_OFF = NUM_LAYERS * LAYER_ROWS     # (VOCAB_EMB, D_EMBED)
PE_OFF = EMB_OFF + VOCAB_EMB          # (N_TOK, D_EMBED)
WOUT_OFF = PE_OFF + N_TOK             # (D_EMBED, VOCAB_PAD)
BOUT_OFF = WOUT_OFF + D_EMBED         # (1, VOCAB_PAD)
SLAB_ROWS = BOUT_OFF + 8              # 520


def _layer_norm(x, gamma, beta):
    """PyTorch nn.LayerNorm over last dim (biased variance, eps=1e-5)."""
    mean = jnp.mean(x, axis=-1, keepdims=True)
    var = jnp.mean((x - mean) ** 2, axis=-1, keepdims=True)
    return (x - mean) * jax.lax.rsqrt(var + LN_EPS) * gamma + beta


# ---------------------------------------------------------------------------
# Single fused Pallas kernel: embedding + PE + all decoder layers + final proj
# ---------------------------------------------------------------------------
def transformer_kernel(tok_ref, slab_ref, out_ref):
    f32 = jnp.float32
    bf16 = jnp.bfloat16

    # --- embedding gather (exact one-hot matmul, f32) + positional encoding ---
    tok = tok_ref[...]                                               # (N_TOK, 1) int32
    vocab_ids = jax.lax.broadcasted_iota(jnp.int32, (N_TOK, VOCAB_EMB), 1)
    onehot = (vocab_ids == tok).astype(f32)                          # (N_TOK, VOCAB_EMB)
    embed = slab_ref[pl.ds(EMB_OFF, VOCAB_EMB), pl.ds(0, D_EMBED)]
    pe = slab_ref[pl.ds(PE_OFF, N_TOK), pl.ds(0, D_EMBED)]
    x = jnp.dot(onehot, embed, preferred_element_type=f32) + pe      # (N_TOK, D)

    # --- constant masks built in-kernel (iota + shifts; no extra input DMAs) ---
    # causal + same-batch keep mask, tiled over the NUM_HEADS score blocks
    ri = jax.lax.broadcasted_iota(jnp.int32, (N_TOK, HN), 0)         # query row (global)
    ci = jax.lax.broadcasted_iota(jnp.int32, (N_TOK, HN), 1)
    key = jnp.bitwise_and(ci, N_TOK - 1)                             # key row within head block
    keep = (key <= ri) & (jnp.right_shift(key, SEQ_SH) == jnp.right_shift(ri, SEQ_SH))

    # block-diagonal selectors for the head-batched score / output matmuls
    rk = jax.lax.broadcasted_iota(jnp.int32, (D_EMBED, HN), 0)
    ck = jax.lax.broadcasted_iota(jnp.int32, (D_EMBED, HN), 1)
    kq_diag = (jnp.right_shift(rk, DK_SH) == jnp.right_shift(ck, NTOK_SH)).astype(f32)

    rv = jax.lax.broadcasted_iota(jnp.int32, (HN, D_EMBED), 0)
    cv = jax.lax.broadcasted_iota(jnp.int32, (HN, D_EMBED), 1)
    vo_diag = (jnp.right_shift(rv, NTOK_SH) == jnp.right_shift(cv, DK_SH)).astype(f32)

    for l in range(NUM_LAYERS):
        base = l * LAYER_ROWS
        wqkv = slab_ref[pl.ds(base + OFF_WQKV, D_EMBED), pl.ds(0, 3 * D_EMBED)]
        w1 = slab_ref[pl.ds(base + OFF_W1, D_EMBED), pl.ds(0, D_FF)]
        w2 = slab_ref[pl.ds(base + OFF_W2, D_FF), pl.ds(0, D_EMBED)]
        ln = slab_ref[pl.ds(base + OFF_LN, 8), pl.ds(0, D_EMBED)]
        g1, b1, g2, b2 = ln[0:1], ln[1:2], ln[2:3], ln[3:4]

        # ---- masked multi-head self-attention (all heads, 2-D matmuls only) ----
        # fused QKV projection: one (16,32)@(32,96) MXU op; 1/sqrt(d_k) is folded into Wq
        qkv = jnp.dot(x.astype(bf16), wqkv.astype(bf16),
                      preferred_element_type=f32)                    # (N_TOK, 3D)
        q = qkv[:, 0:D_EMBED]                                        # head-major columns
        k = qkv[:, D_EMBED:2 * D_EMBED]
        v = qkv[:, 2 * D_EMBED:3 * D_EMBED]

        # all-head scores: S[i, h*N_TOK+m] = q_h[i] . k_h[m] via block-diag K expansion
        kT = k.T                                                     # (D, N_TOK)
        kbd = jnp.concatenate([kT] * NUM_HEADS, axis=1) * kq_diag    # (D, HN)
        s = jnp.dot(q.astype(bf16), kbd.astype(bf16),
                    preferred_element_type=f32)                      # (N_TOK, HN)

        # torch quirk: weight = tril(weight); masked_fill(weight == 0, -inf)
        # (cross-batch entries also -> -inf -> softmax weight 0)
        s = jnp.where(keep & (s != 0.0), s, -jnp.inf)
        p = jnp.exp(s)                       # masked lanes -> 0; max-sub skipped (identical math)
        pb = p.astype(bf16)

        # per-head softmax denominator broadcast to output-column layout, and the
        # attention output in concatenated-head layout, each as one 2-D matmul
        denom = jnp.dot(pb, vo_diag.astype(bf16), preferred_element_type=f32)   # (N_TOK, D)
        vbd = jnp.concatenate([v] * NUM_HEADS, axis=0) * vo_diag                # (HN, D)
        attn = jnp.dot(pb, vbd.astype(bf16), preferred_element_type=f32)        # (N_TOK, D)
        attn = attn * pl.reciprocal(denom, approx=True)

        # residual + dropout(identity in eval) + LayerNorm
        y = _layer_norm(x + attn, g1, b1)

        # ---- position-wise FFN: D -> 4D -> D, no bias, ReLU ----
        f = jnp.dot(y.astype(bf16), w1.astype(bf16), preferred_element_type=f32)
        f = jnp.maximum(f, 0.0)
        f = jnp.dot(f.astype(bf16), w2.astype(bf16), preferred_element_type=f32)
        x = _layer_norm(y + f, g2, b2)

    # final Linear(D, vocab) with bias; vocab padded to 128 -> lane-dense store
    w_out = slab_ref[pl.ds(WOUT_OFF, D_EMBED), pl.ds(0, VOCAB_PAD)]
    b_out = slab_ref[pl.ds(BOUT_OFF, 1), pl.ds(0, VOCAB_PAD)]
    out_ref[...] = jnp.dot(x.astype(bf16), w_out.astype(bf16),
                           preferred_element_type=f32) + b_out


# ---------------------------------------------------------------------------
# Wrapper: single grid-less pallas_call (2 inputs: tokens + parameter slab)
# ---------------------------------------------------------------------------
def positional_encoding(L, D):
    """Port of PositionalEncoding: base 1000, column-parity sin/cos."""
    pos = jnp.arange(L, dtype=jnp.float32)[:, None]
    i = jnp.arange(D, dtype=jnp.float32)[None, :]
    angles = pos / (1000.0 ** (i / D))
    even = (jnp.arange(D) % 2 == 0)[None, :]
    return jnp.where(even, jnp.sin(angles), jnp.cos(angles))


def transformer_forward_impl(slab, tokens):
    B, L = tokens.shape
    assert B * L == N_TOK
    tok2d = tokens.reshape(N_TOK, 1).astype(jnp.int32)
    out = pl.pallas_call(
        transformer_kernel,
        out_shape=jax.ShapeDtypeStruct((N_TOK, VOCAB_PAD), jnp.float32),
    )(tok2d, slab)
    return out.reshape(B, L, VOCAB_PAD)[:, :, :VOCAB]


transformer_forward = jax.jit(transformer_forward_impl)


# ---------------------------------------------------------------------------
# Parameters: raw (PyTorch-like layout) + packed single slab
# ---------------------------------------------------------------------------
def init_params(key):
    keys = jax.random.split(key, 3 + NUM_LAYERS)
    scale = 0.02
    raw = {
        "embed": scale * jax.random.normal(keys[0], (VOCAB, D_EMBED), jnp.float32),
        "w_out": scale * jax.random.normal(keys[1], (D_EMBED, VOCAB), jnp.float32),
        "b_out": scale * jax.random.normal(keys[2], (1, VOCAB), jnp.float32),
        "layers": [],
    }
    for l in range(NUM_LAYERS):
        lk = jax.random.split(keys[3 + l], 5)
        wq = scale * jax.random.normal(lk[0], (NUM_HEADS, D_EMBED, D_K), jnp.float32)
        wk = scale * jax.random.normal(lk[1], (NUM_HEADS, D_EMBED, D_K), jnp.float32)
        wv = scale * jax.random.normal(lk[2], (NUM_HEADS, D_EMBED, D_K), jnp.float32)
        g1 = jnp.ones((1, D_EMBED), jnp.float32)
        b1 = jnp.zeros((1, D_EMBED), jnp.float32)
        w1 = scale * jax.random.normal(lk[3], (D_EMBED, D_FF), jnp.float32)
        w2 = scale * jax.random.normal(lk[4], (D_FF, D_EMBED), jnp.float32)
        g2 = jnp.ones((1, D_EMBED), jnp.float32)
        b2 = jnp.zeros((1, D_EMBED), jnp.float32)
        raw["layers"].append((wq, wk, wv, g1, b1, w1, w2, g2, b2))
    return raw


def _heads_to_2d(w):
    """(H, D, d_k) -> (D, H*d_k) with head-major columns."""
    return jnp.transpose(w, (1, 0, 2)).reshape(D_EMBED, NUM_HEADS * D_K)


def pack_params(raw):
    """Pack every weight + the positional encoding into one (520, 128) f32 slab."""
    slab = jnp.zeros((SLAB_ROWS, SLAB_LANES), jnp.float32)
    for l, (wq, wk, wv, g1, b1, w1, w2, g2, b2) in enumerate(raw["layers"]):
        base = l * LAYER_ROWS
        wqkv2d = jnp.concatenate(
            [_heads_to_2d(wq) * (D_K ** -0.5), _heads_to_2d(wk), _heads_to_2d(wv)],
            axis=1)                                                   # (D, 3D)
        slab = slab.at[base + OFF_WQKV:base + OFF_WQKV + D_EMBED, :3 * D_EMBED].set(wqkv2d)
        slab = slab.at[base + OFF_W1:base + OFF_W1 + D_EMBED, :D_FF].set(w1)
        slab = slab.at[base + OFF_W2:base + OFF_W2 + D_FF, :D_EMBED].set(w2)
        slab = slab.at[base + OFF_LN + 0, :D_EMBED].set(g1[0])
        slab = slab.at[base + OFF_LN + 1, :D_EMBED].set(b1[0])
        slab = slab.at[base + OFF_LN + 2, :D_EMBED].set(g2[0])
        slab = slab.at[base + OFF_LN + 3, :D_EMBED].set(b2[0])
    slab = slab.at[EMB_OFF:EMB_OFF + VOCAB, :D_EMBED].set(raw["embed"])
    pe = jnp.tile(positional_encoding(SEQ, D_EMBED), (BATCH, 1))      # (N_TOK, D)
    slab = slab.at[PE_OFF:PE_OFF + N_TOK, :D_EMBED].set(pe)
    slab = slab.at[WOUT_OFF:WOUT_OFF + D_EMBED, :VOCAB].set(raw["w_out"])
    slab = slab.at[BOUT_OFF:BOUT_OFF + 1, :VOCAB].set(raw["b_out"])
    return slab


# ---------------------------------------------------------------------------
# Pure-JAX reference mirroring the PyTorch module (for the correctness check)
# ---------------------------------------------------------------------------
def reference_forward(raw, tokens):
    B, L = tokens.shape
    x = raw["embed"][tokens] + positional_encoding(L, D_EMBED)[None]
    tril = jnp.tril(jnp.ones((L, L), jnp.bool_))
    for (wq, wk, wv, g1, b1, w1, w2, g2, b2) in raw["layers"]:
        heads = []
        for h in range(NUM_HEADS):
            q = x @ wq[h]
            k = x @ wk[h]
            v = x @ wv[h]
            s = q @ jnp.swapaxes(k, -1, -2) / (D_K ** 0.5)
            s = jnp.where(tril, s, 0.0)
            s = jnp.where(s == 0.0, -jnp.inf, s)
            s = s - jnp.max(s, axis=-1, keepdims=True)
            p = jnp.exp(s)
            p = p / jnp.sum(p, axis=-1, keepdims=True)
            heads.append(p @ v)
        attn = jnp.concatenate(heads, axis=-1)
        y = _layer_norm(x + attn, g1, b1)
        f = jnp.maximum(y @ w1, 0.0) @ w2
        x = _layer_norm(y + f, g2, b2)
    return x @ raw["w_out"] + raw["b_out"]


if __name__ == "__main__":
    key = jax.random.PRNGKey(0)
    pkey, tkey = jax.random.split(key)
    raw_params = init_params(pkey)
    slab = pack_params(raw_params)
    tokens = jax.random.randint(tkey, (BATCH, SEQ), 0, VOCAB, dtype=jnp.int32)

    logits = transformer_forward(slab, tokens)
    jax.block_until_ready(logits)

    assert logits.shape == (BATCH, SEQ, VOCAB)
    assert bool(jnp.all(jnp.isfinite(logits)))

    ref = reference_forward(raw_params, tokens)
    assert bool(jnp.allclose(logits, ref, rtol=5e-2, atol=1e-2))

    print("KERNEL_OK")
</pallas_src>

<mosaic_0001>
module attributes {stable_mosaic.version = 11 : i64} {
  func.func @transformer_kernel(%arg0: memref<16x1xi32, #tpu.memory_space<vmem>>, %arg1: memref<520x128xf32, #tpu.memory_space<vmem>>, %arg2: memref<16x128xf32, #tpu.memory_space<vmem>>) attributes {dimension_semantics = [], scalar_prefetch = 0 : i64, scratch_operands = 0 : i64, tpu.core_type = #tpu.core_type<tc>} {
    %c0 = arith.constant 0 : index
    %c0_0 = arith.constant 0 : index
    %0 = vector.load %arg0[%c0, %c0_0] : memref<16x1xi32, #tpu.memory_space<vmem>>, vector<16x1xi32>
    %1 = tpu.iota {dimensions = array<i32: 1>} : vector<16x64xi32>
    %2 = vector.broadcast %0 : vector<16x1xi32> to vector<16x64xi32>
    %3 = arith.cmpi eq, %1, %2 : vector<16x64xi32>
    %4 = arith.extui %3 : vector<16x64xi1> to vector<16x64xi32>
    %5 = arith.sitofp %4 : vector<16x64xi32> to vector<16x64xf32>
    %c400 = arith.constant 400 : index
    %c0_1 = arith.constant 0 : index
    %6 = vector.load %arg1[%c400, %c0_1] : memref<520x128xf32, #tpu.memory_space<vmem>>, vector<64x32xf32>
    %c464 = arith.constant 464 : index
    %c0_2 = arith.constant 0 : index
    %7 = vector.load %arg1[%c464, %c0_2] : memref<520x128xf32, #tpu.memory_space<vmem>>, vector<16x32xf32>
    %cst = arith.constant dense<0.000000e+00> : vector<16x32xf32>
    %8 = tpu.matmul %5, %6, %cst {dimension_numbers = #tpu.dot_dimension_numbers<[1], [0], [0], [1], [0, 0, 1, 1], [], []>} : vector<16x64xf32>, vector<64x32xf32>, vector<16x32xf32> -> vector<16x32xf32>
    %9 = arith.addf %8, %7 : vector<16x32xf32>
    %10 = tpu.iota {dimensions = array<i32: 0>} : vector<16x64xi32>
    %11 = tpu.iota {dimensions = array<i32: 1>} : vector<16x64xi32>
    %c15_i32 = arith.constant 15 : i32
    %12 = vector.broadcast %c15_i32 : i32 to vector<16x64xi32>
    %13 = arith.andi %11, %12 : vector<16x64xi32>
    %14 = arith.cmpi sle, %13, %10 : vector<16x64xi32>
    %c3_i32 = arith.constant 3 : i32
    %15 = vector.broadcast %c3_i32 : i32 to vector<16x64xi32>
    %16 = arith.shrsi %13, %15 : vector<16x64xi32>
    %c3_i32_3 = arith.constant 3 : i32
    %17 = vector.broadcast %c3_i32_3 : i32 to vector<16x64xi32>
    %18 = arith.shrsi %10, %17 : vector<16x64xi32>
    %19 = arith.cmpi eq, %16, %18 : vector<16x64xi32>
    %20 = arith.andi %14, %19 : vector<16x64xi1>
    %21 = tpu.iota {dimensions = array<i32: 0>} : vector<32x64xi32>
    %22 = tpu.iota {dimensions = array<i32: 1>} : vector<32x64xi32>
    %c3_i32_4 = arith.constant 3 : i32
    %23 = vector.broadcast %c3_i32_4 : i32 to vector<32x64xi32>
    %24 = arith.shrsi %21, %23 : vector<32x64xi32>
    %c4_i32 = arith.constant 4 : i32
    %25 = vector.broadcast %c4_i32 : i32 to vector<32x64xi32>
    %26 = arith.shrsi %22, %25 : vector<32x64xi32>
    %27 = arith.cmpi eq, %24, %26 : vector<32x64xi32>
    %28 = arith.extui %27 : vector<32x64xi1> to vector<32x64xi32>
    %29 = arith.sitofp %28 : vector<32x64xi32> to vector<32x64xf32>
    %30 = tpu.iota {dimensions = array<i32: 0>} : vector<64x32xi32>
    %31 = tpu.iota {dimensions = array<i32: 1>} : vector<64x32xi32>
    %c4_i32_5 = arith.constant 4 : i32
    %32 = vector.broadcast %c4_i32_5 : i32 to vector<64x32xi32>
    %33 = arith.shrsi %30, %32 : vector<64x32xi32>
    %c3_i32_6 = arith.constant 3 : i32
    %34 = vector.broadcast %c3_i32_6 : i32 to vector<64x32xi32>
    %35 = arith.shrsi %31, %34 : vector<64x32xi32>
    %36 = arith.cmpi eq, %33, %35 : vector<64x32xi32>
    %37 = arith.extui %36 : vector<64x32xi1> to vector<64x32xi32>
    %38 = arith.sitofp %37 : vector<64x32xi32> to vector<64x32xf32>
    %c0_7 = arith.constant 0 : index
    %c0_8 = arith.constant 0 : index
    %39 = vector.load %arg1[%c0_7, %c0_8] : memref<520x128xf32, #tpu.memory_space<vmem>>, vector<32x96xf32>
    %c32 = arith.constant 32 : index
    %c0_9 = arith.constant 0 : index
    %40 = vector.load %arg1[%c32, %c0_9] : memref<520x128xf32, #tpu.memory_space<vmem>>, vector<32x128xf32>
    %c64 = arith.constant 64 : index
    %c0_10 = arith.constant 0 : index
    %41 = vector.load %arg1[%c64, %c0_10] : memref<520x128xf32, #tpu.memory_space<vmem>>, vector<128x32xf32>
    %c192 = arith.constant 192 : index
    %c0_11 = arith.constant 0 : index
    %42 = vector.load %arg1[%c192, %c0_11] : memref<520x128xf32, #tpu.memory_space<vmem>>, vector<8x32xf32>
    %43 = vector.extract_strided_slice %42 {offsets = [0, 0], sizes = [1, 32], strides = [1, 1]} : vector<8x32xf32> to vector<1x32xf32>
    %44 = vector.extract_strided_slice %42 {offsets = [1, 0], sizes = [1, 32], strides = [1, 1]} : vector<8x32xf32> to vector<1x32xf32>
    %45 = vector.extract_strided_slice %42 {offsets = [2, 0], sizes = [1, 32], strides = [1, 1]} : vector<8x32xf32> to vector<1x32xf32>
    %46 = vector.extract_strided_slice %42 {offsets = [3, 0], sizes = [1, 32], strides = [1, 1]} : vector<8x32xf32> to vector<1x32xf32>
    %47 = arith.truncf %9 : vector<16x32xf32> to vector<16x32xbf16>
    %48 = arith.truncf %39 : vector<32x96xf32> to vector<32x96xbf16>
    %cst_12 = arith.constant dense<0.000000e+00> : vector<16x96xf32>
    %49 = tpu.matmul %47, %48, %cst_12 {dimension_numbers = #tpu.dot_dimension_numbers<[1], [0], [0], [1], [0, 0, 1, 1], [], []>} : vector<16x32xbf16>, vector<32x96xbf16>, vector<16x96xf32> -> vector<16x96xf32>
    %50 = vector.extract_strided_slice %49 {offsets = [0, 0], sizes = [16, 32], strides = [1, 1]} : vector<16x96xf32> to vector<16x32xf32>
    %51 = vector.extract_strided_slice %49 {offsets = [0, 32], sizes = [16, 32], strides = [1, 1]} : vector<16x96xf32> to vector<16x32xf32>
    %52 = vector.extract_strided_slice %49 {offsets = [0, 64], sizes = [16, 32], strides = [1, 1]} : vector<16x96xf32> to vector<16x32xf32>
    %53 = tpu.transpose %51, [1, 0] : vector<16x32xf32> -> vector<32x16xf32>
    %54 = tpu.concatenate %53, %53, %53, %53 in 1 : vector<32x16xf32>, vector<32x16xf32>, vector<32x16xf32>, vector<32x16xf32> -> vector<32x64xf32>
    %55 = arith.mulf %54, %29 : vector<32x64xf32>
    %56 = arith.truncf %50 : vector<16x32xf32> to vector<16x32xbf16>
    %57 = arith.truncf %55 : vector<32x64xf32> to vector<32x64xbf16>
    %cst_13 = arith.constant dense<0.000000e+00> : vector<16x64xf32>
    %58 = tpu.matmul %56, %57, %cst_13 {dimension_numbers = #tpu.dot_dimension_numbers<[1], [0], [0], [1], [0, 0, 1, 1], [], []>} : vector<16x32xbf16>, vector<32x64xbf16>, vector<16x64xf32> -> vector<16x64xf32>
    %cst_14 = arith.constant 0.000000e+00 : f32
    %59 = vector.broadcast %cst_14 : f32 to vector<16x64xf32>
    %60 = arith.cmpf one, %58, %59 : vector<16x64xf32>
    %61 = arith.andi %20, %60 : vector<16x64xi1>
    %cst_15 = arith.constant 0xFF800000 : f32
    %62 = vector.broadcast %cst_15 : f32 to vector<16x64xf32>
    %63 = arith.select %61, %58, %62 : vector<16x64xi1>, vector<16x64xf32>
    %64 = math.exp %63 : vector<16x64xf32>
    %65 = arith.truncf %64 : vector<16x64xf32> to vector<16x64xbf16>
    %66 = arith.truncf %38 : vector<64x32xf32> to vector<64x32xbf16>
    %cst_16 = arith.constant dense<0.000000e+00> : vector<16x32xf32>
    %67 = tpu.matmul %65, %66, %cst_16 {dimension_numbers = #tpu.dot_dimension_numbers<[1], [0], [0], [1], [0, 0, 1, 1], [], []>} : vector<16x64xbf16>, vector<64x32xbf16>, vector<16x32xf32> -> vector<16x32xf32>
    %68 = tpu.concatenate %52, %52, %52, %52 in 0 : vector<16x32xf32>, vector<16x32xf32>, vector<16x32xf32>, vector<16x32xf32> -> vector<64x32xf32>
    %69 = arith.mulf %68, %38 : vector<64x32xf32>
    %70 = arith.truncf %69 : vector<64x32xf32> to vector<64x32xbf16>
    %cst_17 = arith.constant dense<0.000000e+00> : vector<16x32xf32>
    %71 = tpu.matmul %65, %70, %cst_17 {dimension_numbers = #tpu.dot_dimension_numbers<[1], [0], [0], [1], [0, 0, 1, 1], [], []>} : vector<16x64xbf16>, vector<64x32xbf16>, vector<16x32xf32> -> vector<16x32xf32>
    %72 = tpu.reciprocal %67 {approx = true} : vector<16x32xf32> -> vector<16x32xf32>
    %73 = arith.mulf %71, %72 : vector<16x32xf32>
    %74 = arith.addf %9, %73 : vector<16x32xf32>
    %cst_18 = arith.constant dense<0.000000e+00> : vector<16xf32>
    %75 = vector.multi_reduction <add>, %74, %cst_18 [1] : vector<16x32xf32> to vector<16xf32>
    %76 = vector.shape_cast %75 : vector<16xf32> to vector<16x1xf32>
    %cst_19 = arith.constant 3.200000e+01 : f32
    %77 = vector.broadcast %cst_19 : f32 to vector<16x1xf32>
    %78 = arith.divf %76, %77 : vector<16x1xf32>
    %79 = vector.broadcast %78 : vector<16x1xf32> to vector<16x32xf32>
    %80 = arith.subf %74, %79 : vector<16x32xf32>
    %81 = arith.mulf %80, %80 : vector<16x32xf32>
    %cst_20 = arith.constant dense<0.000000e+00> : vector<16xf32>
    %82 = vector.multi_reduction <add>, %81, %cst_20 [1] : vector<16x32xf32> to vector<16xf32>
    %83 = vector.shape_cast %82 : vector<16xf32> to vector<16x1xf32>
    %cst_21 = arith.constant 3.200000e+01 : f32
    %84 = vector.broadcast %cst_21 : f32 to vector<16x1xf32>
    %85 = arith.divf %83, %84 : vector<16x1xf32>
    %86 = vector.broadcast %78 : vector<16x1xf32> to vector<16x32xf32>
    %87 = arith.subf %74, %86 : vector<16x32xf32>
    %cst_22 = arith.constant 9.99999974E-6 : f32
    %88 = vector.broadcast %cst_22 : f32 to vector<16x1xf32>
    %89 = arith.addf %85, %88 : vector<16x1xf32>
    %90 = math.rsqrt %89 : vector<16x1xf32>
    %91 = vector.broadcast %90 : vector<16x1xf32> to vector<16x32xf32>
    %92 = arith.mulf %87, %91 : vector<16x32xf32>
    %93 = vector.broadcast %43 : vector<1x32xf32> to vector<16x32xf32>
    %94 = arith.mulf %92, %93 : vector<16x32xf32>
    %95 = vector.broadcast %44 : vector<1x32xf32> to vector<16x32xf32>
    %96 = arith.addf %94, %95 : vector<16x32xf32>
    %97 = arith.truncf %96 : vector<16x32xf32> to vector<16x32xbf16>
    %98 = arith.truncf %40 : vector<32x128xf32> to vector<32x128xbf16>
    %cst_23 = arith.constant dense<0.000000e+00> : vector<16x128xf32>
    %99 = tpu.matmul %97, %98, %cst_23 {dimension_numbers = #tpu.dot_dimension_numbers<[1], [0], [0], [1], [0, 0, 1, 1], [], []>} : vector<16x32xbf16>, vector<32x128xbf16>, vector<16x128xf32> -> vector<16x128xf32>
    %cst_24 = arith.constant 0.000000e+00 : f32
    %100 = vector.broadcast %cst_24 : f32 to vector<16x128xf32>
    %101 = arith.maximumf %99, %100 : vector<16x128xf32>
    %102 = arith.truncf %101 : vector<16x128xf32> to vector<16x128xbf16>
    %103 = arith.truncf %41 : vector<128x32xf32> to vector<128x32xbf16>
    %cst_25 = arith.constant dense<0.000000e+00> : vector<16x32xf32>
    %104 = tpu.matmul %102, %103, %cst_25 {dimension_numbers = #tpu.dot_dimension_numbers<[1], [0], [0], [1], [0, 0, 1, 1], [], []>} : vector<16x128xbf16>, vector<128x32xbf16>, vector<16x32xf32> -> vector<16x32xf32>
    %105 = arith.addf %96, %104 : vector<16x32xf32>
    %cst_26 = arith.constant dense<0.000000e+00> : vector<16xf32>
    %106 = vector.multi_reduction <add>, %105, %cst_26 [1] : vector<16x32xf32> to vector<16xf32>
    %107 = vector.shape_cast %106 : vector<16xf32> to vector<16x1xf32>
    %cst_27 = arith.constant 3.200000e+01 : f32
    %108 = vector.broadcast %cst_27 : f32 to vector<16x1xf32>
    %109 = arith.divf %107, %108 : vector<16x1xf32>
    %110 = vector.broadcast %109 : vector<16x1xf32> to vector<16x32xf32>
    %111 = arith.subf %105, %110 : vector<16x32xf32>
    %112 = arith.mulf %111, %111 : vector<16x32xf32>
    %cst_28 = arith.constant dense<0.000000e+00> : vector<16xf32>
    %113 = vector.multi_reduction <add>, %112, %cst_28 [1] : vector<16x32xf32> to vector<16xf32>
    %114 = vector.shape_cast %113 : vector<16xf32> to vector<16x1xf32>
    %cst_29 = arith.constant 3.200000e+01 : f32
    %115 = vector.broadcast %cst_29 : f32 to vector<16x1xf32>
    %116 = arith.divf %114, %115 : vector<16x1xf32>
    %117 = vector.broadcast %109 : vector<16x1xf32> to vector<16x32xf32>
    %118 = arith.subf %105, %117 : vector<16x32xf32>
    %cst_30 = arith.constant 9.99999974E-6 : f32
    %119 = vector.broadcast %cst_30 : f32 to vector<16x1xf32>
    %120 = arith.addf %116, %119 : vector<16x1xf32>
    %121 = math.rsqrt %120 : vector<16x1xf32>
    %122 = vector.broadcast %121 : vector<16x1xf32> to vector<16x32xf32>
    %123 = arith.mulf %118, %122 : vector<16x32xf32>
    %124 = vector.broadcast %45 : vector<1x32xf32> to vector<16x32xf32>
    %125 = arith.mulf %123, %124 : vector<16x32xf32>
    %126 = vector.broadcast %46 : vector<1x32xf32> to vector<16x32xf32>
    %127 = arith.addf %125, %126 : vector<16x32xf32>
    %c200 = arith.constant 200 : index
    %c0_31 = arith.constant 0 : index
    %128 = vector.load %arg1[%c200, %c0_31] : memref<520x128xf32, #tpu.memory_space<vmem>>, vector<32x96xf32>
    %c232 = arith.constant 232 : index
    %c0_32 = arith.constant 0 : index
    %129 = vector.load %arg1[%c232, %c0_32] : memref<520x128xf32, #tpu.memory_space<vmem>>, vector<32x128xf32>
    %c264 = arith.constant 264 : index
    %c0_33 = arith.constant 0 : index
    %130 = vector.load %arg1[%c264, %c0_33] : memref<520x128xf32, #tpu.memory_space<vmem>>, vector<128x32xf32>
    %c392 = arith.constant 392 : index
    %c0_34 = arith.constant 0 : index
    %131 = vector.load %arg1[%c392, %c0_34] : memref<520x128xf32, #tpu.memory_space<vmem>>, vector<8x32xf32>
    %132 = vector.extract_strided_slice %131 {offsets = [0, 0], sizes = [1, 32], strides = [1, 1]} : vector<8x32xf32> to vector<1x32xf32>
    %133 = vector.extract_strided_slice %131 {offsets = [1, 0], sizes = [1, 32], strides = [1, 1]} : vector<8x32xf32> to vector<1x32xf32>
    %134 = vector.extract_strided_slice %131 {offsets = [2, 0], sizes = [1, 32], strides = [1, 1]} : vector<8x32xf32> to vector<1x32xf32>
    %135 = vector.extract_strided_slice %131 {offsets = [3, 0], sizes = [1, 32], strides = [1, 1]} : vector<8x32xf32> to vector<1x32xf32>
    %136 = arith.truncf %127 : vector<16x32xf32> to vector<16x32xbf16>
    %137 = arith.truncf %128 : vector<32x96xf32> to vector<32x96xbf16>
    %cst_35 = arith.constant dense<0.000000e+00> : vector<16x96xf32>
    %138 = tpu.matmul %136, %137, %cst_35 {dimension_numbers = #tpu.dot_dimension_numbers<[1], [0], [0], [1], [0, 0, 1, 1], [], []>} : vector<16x32xbf16>, vector<32x96xbf16>, vector<16x96xf32> -> vector<16x96xf32>
    %139 = vector.extract_strided_slice %138 {offsets = [0, 0], sizes = [16, 32], strides = [1, 1]} : vector<16x96xf32> to vector<16x32xf32>
    %140 = vector.extract_strided_slice %138 {offsets = [0, 32], sizes = [16, 32], strides = [1, 1]} : vector<16x96xf32> to vector<16x32xf32>
    %141 = vector.extract_strided_slice %138 {offsets = [0, 64], sizes = [16, 32], strides = [1, 1]} : vector<16x96xf32> to vector<16x32xf32>
    %142 = tpu.transpose %140, [1, 0] : vector<16x32xf32> -> vector<32x16xf32>
    %143 = tpu.concatenate %142, %142, %142, %142 in 1 : vector<32x16xf32>, vector<32x16xf32>, vector<32x16xf32>, vector<32x16xf32> -> vector<32x64xf32>
    %144 = arith.mulf %143, %29 : vector<32x64xf32>
    %145 = arith.truncf %139 : vector<16x32xf32> to vector<16x32xbf16>
    %146 = arith.truncf %144 : vector<32x64xf32> to vector<32x64xbf16>
    %cst_36 = arith.constant dense<0.000000e+00> : vector<16x64xf32>
    %147 = tpu.matmul %145, %146, %cst_36 {dimension_numbers = #tpu.dot_dimension_numbers<[1], [0], [0], [1], [0, 0, 1, 1], [], []>} : vector<16x32xbf16>, vector<32x64xbf16>, vector<16x64xf32> -> vector<16x64xf32>
    %cst_37 = arith.constant 0.000000e+00 : f32
    %148 = vector.broadcast %cst_37 : f32 to vector<16x64xf32>
    %149 = arith.cmpf one, %147, %148 : vector<16x64xf32>
    %150 = arith.andi %20, %149 : vector<16x64xi1>
    %cst_38 = arith.constant 0xFF800000 : f32
    %151 = vector.broadcast %cst_38 : f32 to vector<16x64xf32>
    %152 = arith.select %150, %147, %151 : vector<16x64xi1>, vector<16x64xf32>
    %153 = math.exp %152 : vector<16x64xf32>
    %154 = arith.truncf %153 : vector<16x64xf32> to vector<16x64xbf16>
    %155 = arith.truncf %38 : vector<64x32xf32> to vector<64x32xbf16>
    %cst_39 = arith.constant dense<0.000000e+00> : vector<16x32xf32>
    %156 = tpu.matmul %154, %155, %cst_39 {dimension_numbers = #tpu.dot_dimension_numbers<[1], [0], [0], [1], [0, 0, 1, 1], [], []>} : vector<16x64xbf16>, vector<64x32xbf16>, vector<16x32xf32> -> vector<16x32xf32>
    %157 = tpu.concatenate %141, %141, %141, %141 in 0 : vector<16x32xf32>, vector<16x32xf32>, vector<16x32xf32>, vector<16x32xf32> -> vector<64x32xf32>
    %158 = arith.mulf %157, %38 : vector<64x32xf32>
    %159 = arith.truncf %158 : vector<64x32xf32> to vector<64x32xbf16>
    %cst_40 = arith.constant dense<0.000000e+00> : vector<16x32xf32>
    %160 = tpu.matmul %154, %159, %cst_40 {dimension_numbers = #tpu.dot_dimension_numbers<[1], [0], [0], [1], [0, 0, 1, 1], [], []>} : vector<16x64xbf16>, vector<64x32xbf16>, vector<16x32xf32> -> vector<16x32xf32>
    %161 = tpu.reciprocal %156 {approx = true} : vector<16x32xf32> -> vector<16x32xf32>
    %162 = arith.mulf %160, %161 : vector<16x32xf32>
    %163 = arith.addf %127, %162 : vector<16x32xf32>
    %cst_41 = arith.constant dense<0.000000e+00> : vector<16xf32>
    %164 = vector.multi_reduction <add>, %163, %cst_41 [1] : vector<16x32xf32> to vector<16xf32>
    %165 = vector.shape_cast %164 : vector<16xf32> to vector<16x1xf32>
    %cst_42 = arith.constant 3.200000e+01 : f32
    %166 = vector.broadcast %cst_42 : f32 to vector<16x1xf32>
    %167 = arith.divf %165, %166 : vector<16x1xf32>
    %168 = vector.broadcast %167 : vector<16x1xf32> to vector<16x32xf32>
    %169 = arith.subf %163, %168 : vector<16x32xf32>
    %170 = arith.mulf %169, %169 : vector<16x32xf32>
    %cst_43 = arith.constant dense<0.000000e+00> : vector<16xf32>
    %171 = vector.multi_reduction <add>, %170, %cst_43 [1] : vector<16x32xf32> to vector<16xf32>
    %172 = vector.shape_cast %171 : vector<16xf32> to vector<16x1xf32>
    %cst_44 = arith.constant 3.200000e+01 : f32
    %173 = vector.broadcast %cst_44 : f32 to vector<16x1xf32>
    %174 = arith.divf %172, %173 : vector<16x1xf32>
    %175 = vector.broadcast %167 : vector<16x1xf32> to vector<16x32xf32>
    %176 = arith.subf %163, %175 : vector<16x32xf32>
    %cst_45 = arith.constant 9.99999974E-6 : f32
    %177 = vector.broadcast %cst_45 : f32 to vector<16x1xf32>
    %178 = arith.addf %174, %177 : vector<16x1xf32>
    %179 = math.rsqrt %178 : vector<16x1xf32>
    %180 = vector.broadcast %179 : vector<16x1xf32> to vector<16x32xf32>
    %181 = arith.mulf %176, %180 : vector<16x32xf32>
    %182 = vector.broadcast %132 : vector<1x32xf32> to vector<16x32xf32>
    %183 = arith.mulf %181, %182 : vector<16x32xf32>
    %184 = vector.broadcast %133 : vector<1x32xf32> to vector<16x32xf32>
    %185 = arith.addf %183, %184 : vector<16x32xf32>
    %186 = arith.truncf %185 : vector<16x32xf32> to vector<16x32xbf16>
    %187 = arith.truncf %129 : vector<32x128xf32> to vector<32x128xbf16>
    %cst_46 = arith.constant dense<0.000000e+00> : vector<16x128xf32>
    %188 = tpu.matmul %186, %187, %cst_46 {dimension_numbers = #tpu.dot_dimension_numbers<[1], [0], [0], [1], [0, 0, 1, 1], [], []>} : vector<16x32xbf16>, vector<32x128xbf16>, vector<16x128xf32> -> vector<16x128xf32>
    %cst_47 = arith.constant 0.000000e+00 : f32
    %189 = vector.broadcast %cst_47 : f32 to vector<16x128xf32>
    %190 = arith.maximumf %188, %189 : vector<16x128xf32>
    %191 = arith.truncf %190 : vector<16x128xf32> to vector<16x128xbf16>
    %192 = arith.truncf %130 : vector<128x32xf32> to vector<128x32xbf16>
    %cst_48 = arith.constant dense<0.000000e+00> : vector<16x32xf32>
    %193 = tpu.matmul %191, %192, %cst_48 {dimension_numbers = #tpu.dot_dimension_numbers<[1], [0], [0], [1], [0, 0, 1, 1], [], []>} : vector<16x128xbf16>, vector<128x32xbf16>, vector<16x32xf32> -> vector<16x32xf32>
    %194 = arith.addf %185, %193 : vector<16x32xf32>
    %cst_49 = arith.constant dense<0.000000e+00> : vector<16xf32>
    %195 = vector.multi_reduction <add>, %194, %cst_49 [1] : vector<16x32xf32> to vector<16xf32>
    %196 = vector.shape_cast %195 : vector<16xf32> to vector<16x1xf32>
    %cst_50 = arith.constant 3.200000e+01 : f32
    %197 = vector.broadcast %cst_50 : f32 to vector<16x1xf32>
    %198 = arith.divf %196, %197 : vector<16x1xf32>
    %199 = vector.broadcast %198 : vector<16x1xf32> to vector<16x32xf32>
    %200 = arith.subf %194, %199 : vector<16x32xf32>
    %201 = arith.mulf %200, %200 : vector<16x32xf32>
    %cst_51 = arith.constant dense<0.000000e+00> : vector<16xf32>
    %202 = vector.multi_reduction <add>, %201, %cst_51 [1] : vector<16x32xf32> to vector<16xf32>
    %203 = vector.shape_cast %202 : vector<16xf32> to vector<16x1xf32>
    %cst_52 = arith.constant 3.200000e+01 : f32
    %204 = vector.broadcast %cst_52 : f32 to vector<16x1xf32>
    %205 = arith.divf %203, %204 : vector<16x1xf32>
    %206 = vector.broadcast %198 : vector<16x1xf32> to vector<16x32xf32>
    %207 = arith.subf %194, %206 : vector<16x32xf32>
    %cst_53 = arith.constant 9.99999974E-6 : f32
    %208 = vector.broadcast %cst_53 : f32 to vector<16x1xf32>
    %209 = arith.addf %205, %208 : vector<16x1xf32>
    %210 = math.rsqrt %209 : vector<16x1xf32>
    %211 = vector.broadcast %210 : vector<16x1xf32> to vector<16x32xf32>
    %212 = arith.mulf %207, %211 : vector<16x32xf32>
    %213 = vector.broadcast %134 : vector<1x32xf32> to vector<16x32xf32>
    %214 = arith.mulf %212, %213 : vector<16x32xf32>
    %215 = vector.broadcast %135 : vector<1x32xf32> to vector<16x32xf32>
    %216 = arith.addf %214, %215 : vector<16x32xf32>
    %c480 = arith.constant 480 : index
    %c0_54 = arith.constant 0 : index
    %217 = vector.load %arg1[%c480, %c0_54] : memref<520x128xf32, #tpu.memory_space<vmem>>, vector<32x128xf32>
    %c512 = arith.constant 512 : index
    %c0_55 = arith.constant 0 : index
    %218 = vector.load %arg1[%c512, %c0_55] : memref<520x128xf32, #tpu.memory_space<vmem>>, vector<1x128xf32>
    %219 = arith.truncf %216 : vector<16x32xf32> to vector<16x32xbf16>
    %220 = arith.truncf %217 : vector<32x128xf32> to vector<32x128xbf16>
    %cst_56 = arith.constant dense<0.000000e+00> : vector<16x128xf32>
    %221 = tpu.matmul %219, %220, %cst_56 {dimension_numbers = #tpu.dot_dimension_numbers<[1], [0], [0], [1], [0, 0, 1, 1], [], []>} : vector<16x32xbf16>, vector<32x128xbf16>, vector<16x128xf32> -> vector<16x128xf32>
    %222 = vector.broadcast %218 : vector<1x128xf32> to vector<16x128xf32>
    %223 = arith.addf %221, %222 : vector<16x128xf32>
    %c0_57 = arith.constant 0 : index
    %c0_58 = arith.constant 0 : index
    %224 = vector.load %arg2[%c0_57, %c0_58] : memref<16x128xf32, #tpu.memory_space<vmem>>, vector<16x128xf32>
    tpu.vector_store %arg2[%c0_57, %c0_58], %223 {strides = array<i32>} : memref<16x128xf32, #tpu.memory_space<vmem>>, vector<16x128xf32>,
    return
  }
}

</mosaic_0001>

<bundles_post_ra>
// kernel: transformer_forward_impl.1
= control target key start
LH: loop header
LB: loop body
LE: loop exit
PB: predicated region body
PF: predicated region fallthrough
CT: control target
= control target key end

     0   :  { %7 = vsyncpa [#allocation3], 0  ;;  %s2357_s0 = inlined_call_operand.vmem [shape: s32[16,1], index: 0, kind: input, shape index: {}]   ;;  %s2358_s1 = inlined_call_operand.hbm [shape: f32[520,128], index: 1, kind: input, shape index: {}]   ;;  %s2359_s2 = inlined_call_operand.hbm [shape: f32[16,128], index: 2, kind: output, shape index: {}]  }
   0x1   :  { %8 = vsyncpa [#allocation4], 0  ;;  %s1767_s9 = smov [#allocation2]   ;;  %s1719_s13 = scalar_lea.hbm %s2358_s1, 8320 }
   0x2   :  { %s16_s10 = sshll.u32 %s1767_s9, 4  ;;  %p1720_p0 = scmp.ne.s32.totalorder %s2358_s1, %s1719_s13  ;;  %s17_s10 = int_to_ptr.vmem [resolvable:$true] %s16_s10 }
   0x3   :  { %p1723_p1 = scmp.lt.u32.totalorder %s1719_s13, %s2358_s1 }
   0x5   :  { %p1725_p2 = pnand %p1723_p1, %p1720_p0 }
   0x7   :  { %1728 = shalt.err (!%p1725_p2)
}
   0x8   :  { %s1729_s18 = scalar_lea.vmem %s17_s10, 8320  ;;  %p1734_p4 = scmp.lt.s32.totalorder %s17_s10, %s17_s10 }
   0x9   :  { %p1730_p3 = scmp.ne.s32.totalorder %s17_s10, %s1729_s18  ;;  %p1735_p5 = scmp.lt.s32.totalorder %s1729_s18, %s1729_s18 }
   0xb   :  { %p1736_p6 = por %p1735_p5, %p1734_p4 }
   0xd   :  { %p1737_p7 = pnand %p1736_p6, %p1730_p3 }
   0xf   :  { %1740 = shalt.err (!%p1737_p7)
}
  0x10   :  { %s1768_s19 = smov 128   ;;  %s1769_s20 = smov 8  }
  0x11   :  { %22 = dma.hbm_to_vmem [thread:$0]  %s2358_s1, 8320, %s17_s10, [#allocation3], %s1768_s19, %s1768_s19, %s1769_s20  }
  0x12   :  { %1763 = dma.done.wait [#allocation3], 8320  }
  0x13   :  { %1764 = vsyncadd [#allocation3], 4294958976  ;;  %v1770_v0 = vmov 0   ;;  %v27_v1 = vld [vmem:[%s2357_s0] sm:$0xff]  ;;  %v43_v2 = vld [vmem:[#allocation2 + $0x190] sm:$0xff]  ;;  %v1771_v9 = vmov 0.0   ;;  %v29_v16 = vlaneseq }
  0x14   :  { %1666 = vset.pattern.permute.xlu0 %v1770_v0  ;;  %v44_v3 = vld [vmem:[#allocation2 + $0x198] sm:$0xff]  ;;  %v45_v4 = vld [vmem:[#allocation2 + $0x1a0] sm:$0xff]  ;;  %v46_v5 = vld [vmem:[#allocation2 + $0x1a8] sm:$0xff]  ;;  %1509 = vmatprep.subr.bf16.mxu0 %v1771_v9  ;;  %vm2369_vm0 = vcmask 523264   ;;  %vm2367_vm3 = vmmov 0   ;;  %vm2366_vm4 = vcmask 261120  }
  0x15   :  { %32 = vperm.xlu0 %1666, %v27_v1   ;;  %v28_v6 = vld [vmem:[%s2357_s0 + $0x8] sm:$0xff]  ;;  %v1637_v7 = vpack.c.bf16 %v44_v3, %v43_v2  ;;  %v1641_v8 = vpack.c.bf16 %v46_v5, %v45_v4  ;;  %v47_v10 = vld [vmem:[#allocation2 + $0x1b0] sm:$0xff]  ;;  %v48_v11 = vld [vmem:[#allocation2 + $0x1b8] sm:$0xff]  ;;  %v1818_v17 = vand.u32 127, %v29_v16  ;;  %1517 = vmatprep.mubr.msk.bf16.mxu0 %vm2367_vm3, %v1771_v9  ;;  %s1773_s0 = smov 96   ;;  %s1774_s1 = smov 16  }
  0x16   :  { %v1645_v12 = vpack.c.bf16 %v48_v11, %v47_v10  ;;  %v49_v13 = vld [vmem:[#allocation2 + $0x1c0] sm:$0xff]  ;;  %v50_v14 = vld [vmem:[#allocation2 + $0x1c8] sm:$0xff]  ;;  %v204_v25 = vld [vmem:[#allocation2 + $0x10] sm:$0xff]  ;;  %s1775_s27 = smov 32   ;;  %s1776_s28 = smov 48   ;;  %v1873_v46 = vshrl.u32 %v29_v16, 7 }
  0x17   :  { %1638 = vmatprep.subr.bf16.mxu1 %v1637_v7  ;;  %v1649_v15 = vpack.c.bf16 %v50_v14, %v49_v13  ;;  %v202_v19 = vld [vmem:[#allocation2] sm:$0xff]  ;;  %v203_v20 = vld [vmem:[#allocation2 + $0x8] sm:$0xff]  ;;  %v205_v26 = vld [vmem:[#allocation2 + $0x18] sm:$0xff]  ;;  %v177_v50 = vshra.s32 %v1818_v17, 3  ;;  %s1777_s29 = smov 64   ;;  %v2383_v14 = vmov 0 }
  0x18   :  { %1640 = vmatpush3.bf16.msra.mxu1 %v1637_v7  ;;  %v228_v23 = vpack.c.bf16 %v203_v20, %v202_v19  ;;  %v229_v27 = vpack.c.bf16 %v205_v26, %v204_v25  ;;  %v52_v28 = vld [vmem:[#allocation2 + $0x1d8] sm:$0xff]  ;;  %v51_v29 = vld [vmem:[#allocation2 + $0x1d0] sm:$0xff]  ;;  %v1878_v47 = vadd.s32 8, %v1873_v46  ;;  %v1883_v48 = vadd.s32 16, %v1873_v46  ;;  %s1779_s30 = smov [#allocation5]  }
  0x19   :  { %35 = vperm.xlu0 %1666, %v28_v6   ;;  %1642 = vmatprep.subr.bf16.mxu1 %v1641_v8  ;;  %v1886_v49 = vadd.s32 24, %v1873_v46  ;;  %v169_v51 = vshra.s32 %v1873_v46, 4  ;;  %v165_v57 = vadd.s32 32, %v1873_v46  ;;  %v166_v58 = vadd.s32 40, %v1873_v46  ;;  %s1349_s3 = sshll.u32 %s1779_s30, 4  ;;  %s1350_s3 = int_to_ptr.vmem [resolvable:$true] %s1349_s3 }
  0x1a   :  { %v170_v52 = vshra.s32 %v1878_v47, 4  ;;  %v171_v53 = vshra.s32 %v1883_v48, 4  ;;  %v167_v1 = vadd.s32 48, %v1873_v46  ;;  %v168_v2 = vadd.s32 56, %v1873_v46  ;;  %s1741_s4 = scalar_lea.vmem %s1350_s3, 256  ;;  %p1746_p9 = scmp.lt.s32.totalorder %s1350_s3, %s1350_s3 }
  0x1b   :  { %v172_v54 = vshra.s32 %v1886_v49, 4  ;;  %vm1895_vm5 = vcmp.eq.s32.totalorder %v169_v51, %v177_v50  ;;  %v173_v63 = vshra.s32 %v165_v57, 4  ;;  %v174_v0 = vshra.s32 %v166_v58, 4  ;;  %p1742_p8 = scmp.ne.s32.totalorder %s1350_s3, %s1741_s4  ;;  %p1747_p10 = scmp.lt.s32.totalorder %s1741_s4, %s1741_s4 }
  0x1c   :  { %1644 = vmatpush3.bf16.msra.mxu1 %v1641_v8  ;;  %vm1899_vm6 = vcmp.eq.s32.totalorder %v170_v52, %v177_v50  ;;  %v1369_v59 = vsel %vm1895_vm5, 1.0, %v1771_v9  ;;  %vm1913_vm7 = vcmp.eq.s32.totalorder %v171_v53, %v177_v50  ;;  %v175_v8 = vshra.s32 %v167_v1, 4 }
  0x1d   :  { %1646 = vmatprep.subr.bf16.mxu1 %v1645_v12  ;;  %v1370_v60 = vsel %vm1899_vm6, 1.0, %v1771_v9  ;;  %vm1917_vm8 = vcmp.eq.s32.totalorder %v172_v54, %v177_v50  ;;  %v1371_v4 = vsel %vm1913_vm7, 1.0, %v1771_v9  ;;  %vm1931_vm9 = vcmp.eq.s32.totalorder %v173_v63, %v177_v50  ;;  %p1748_p11 = por %p1747_p10, %p1746_p9 }
  0x1e   :  { %v1667_v3 = vpack.i.bf16 %v1370_v60, %v1369_v59  ;;  %v1372_v5 = vsel %vm1917_vm8, 1.0, %v1771_v9  ;;  %vm1935_vm10 = vcmp.eq.s32.totalorder %v174_v0, %v177_v50  ;;  %v176_v10 = vshra.s32 %v168_v2, 4 }
  0x1f   :  { %v1672_v11 = vpack.i.bf16 %v1372_v5, %v1371_v4  ;;  %v1374_v13 = vsel %vm1935_vm10, 1.0, %v1771_v9  ;;  %vm1946_vm11 = vcmp.eq.s32.totalorder %v175_v8, %v177_v50  ;;  %v152_v25 = vshra.s32 %v1818_v17, 4  ;;  %p1749_p12 = pnand %p1748_p11, %p1742_p8 }
  0x20   :  { %1648 = vmatpush3.bf16.msra.mxu1 %v1645_v12  ;;  %v1373_v12 = vsel %vm1931_vm9, 1.0, %v1771_v9  ;;  %v2384_v14 = vsel %vm1946_vm11, 4294967295, %v2383_v14  ;;  %vm1950_vm12 = vcmp.eq.s32.totalorder %v176_v10, %v177_v50  ;;  %vm2365_vm13 = vcmask 130048  }
  0x21   :  { %1650 = vmatprep.subr.bf16.mxu1 %v1649_v15  ;;  %v1677_v16 = vpack.i.bf16 %v1374_v13, %v1373_v12  ;;  %v1376_v19 = vsel %vm1950_vm12, 1.0, %v1771_v9  ;;  %vm2364_vm15 = vcmask 392192   ;;  %v151_v58 = vshra.s32 %v1886_v49, 3 }
  0x24   :  { %1652 = vmatpush3.bf16.msra.mxu1 %v1649_v15 }
  0x25   :  { %1493 = vmatprep.subr.bf16.mxu1 %v1771_v9 }
  0x94   :  { %v33_v18 = vpop.permute.xlu0 %32 }
  0x95   :  { %vm37_vm1 = vcmp.eq.s32.totalorder %v1818_v17, %v33_v18  ;;  %v1375_v18 = vsel %vm1946_vm11, 1.0, %v1771_v9 }
  0x96   :  { %v1361_v21 = vsel %vm37_vm1, 1.0, %v1771_v9  ;;  %v1682_v20 = vpack.i.bf16 %v1376_v19, %v1375_v18 }
  0x97   :  { %1490 = vmatprep.mubr.msk.f32.mxu1 %vm2369_vm0, %v1361_v21 }
  0x98   :  { %v36_v22 = vpop.permute.xlu0 %35 }
  0x99   :  { %vm38_vm2 = vcmp.eq.s32.totalorder %v1818_v17, %v36_v22 }
  0x9a   :  { %v1362_v24 = vsel %vm38_vm2, 1.0, %v1771_v9 }
  0x9b   :  { %1491 = vmatmul.mubr.msk.f32.vlgmr.msra.gmra.mrb[0].mxu1 %vm2369_vm0, %v1362_v24  ;;  %v142_v24 = vshra.s32 %v1873_v46, 3 }
  0x9c   :  { %1494 = vmatpush3.bf16.msra.mxu1 %v228_v23  ;;  %1497 = vmatprep.mubr.msk.bf16.mxu1 %vm2367_vm3, %v1771_v9 }
  0x9d   :  { %1495 = vmatprep.subr.bf16.mxu1 %v1771_v9  ;;  %vm153_vm14 = vcmp.eq.s32.totalorder %v142_v24, %v152_v25 }
  0xa0   :  { %1496 = vmatpush3.bf16.msra.mxu1 %v229_v27  ;;  %v143_v27 = vshra.s32 %v1878_v47, 3 }
  0xa1   :  { %1501 = vmatprep.subr.bf16.mxu1 %v1771_v9 }
  0xa2   :  { %vm154_vm1 = vcmp.eq.s32.totalorder %v143_v27, %v152_v25 }
 0x16e   :  { %v1492_v30 = vpop.f32.mrb[0].mxu1 }
 0x16f   :  { %v1832_v31 = vadd.f32 %v1492_v30, %v52_v28  ;;  %v126_v32 = vpop.f32.mrb[1].mxu1 }
 0x170   :  { %v1834_v33 = vadd.f32 %v126_v32, %v51_v29  ;;  %v1974_v32 = vsel %vm153_vm14, 1.0, %v1771_v9  ;;  %vm156_vm14 = vcmp.eq.s32.totalorder %v151_v58, %v152_v25 }
 0x172   :  { %v227_v34 = vpack.c.bf16 %v1832_v31, %v1834_v33 }
 0x174   :  { %1498 = vmatmul.mubr.msk.bf16.vlgmr.msra.gmra.mrb[4].mxu1 %vm2366_vm4, %v227_v34 }
 0x175   :  { %1505 = vmatprep.mubr.msk.bf16.mxu1 %vm2367_vm3, %v1771_v9 }
 0x247   :  { %v1841_v35 = vpop.f32.mrb[4].mxu1 }
 0x248   :  { %277 = vrot.lane.b32.xlu1 %v1841_v35, %s1773_s0  ;;  %v1499_v36 = vpop.f32.mrb[5].mxu1 }
 0x249   :  { %v1845_v37 = vpop.f32.mrb[6].mxu1 }
 0x24a   :  { %v373_v38 = vpack.c.bf16 %v1845_v37, %v1841_v35  ;;  %v1500_v39 = vpop.f32.mrb[7].mxu1 }
 0x24b   :  { %v1980_v39 = vsel %vm154_vm1, 1.0, %v1771_v9  ;;  %vm2363_vm1 = vmpackc.low %vm1899_vm6, %vm1895_vm5 }
 0x24c   :  { %279 = vrot.lane.b32.xlu1 %v1845_v37, %s1773_s0 }
 0x2ba   :  { %v278_v40 = vpop.permute.xlu1 %277 }
 0x2bb   :  { %283 = vxpose.xlu0.b32.start [1/2] (short) (narrow) %v278_v40, 32 }
 0x2be   :  { %v280_v41 = vpop.permute.xlu1 %279 }
 0x2bf   :  { %284 = vxpose.xlu0.b32.end [2/2] (short) (narrow) %v280_v41, 32 }
 0x33b   :  { %v1851_v42 = vpop.trf.xlu0 }
 0x33c   :  { %319 = vrot.lane.b32.xlu1 %v1851_v42, %s1774_s1 }
 0x33f   :  { %v1855_v43 = vpop.trf.xlu0 }
 0x340   :  { %331 = vrot.lane.b32.xlu1 %v1851_v42, %s1775_s27 }
 0x343   :  { %v1859_v44 = vpop.trf.xlu0 }
 0x344   :  { %343 = vrot.lane.b32.xlu1 %v1851_v42, %s1776_s28 }
 0x347   :  { %v1863_v45 = vpop.trf.xlu0 }
 0x348   :  { %321 = vrot.lane.b32.xlu1 %v1855_v43, %s1774_s1  ;;  %337 = vrot.lane.b32.xlu0 %v1863_v45, %s1775_s27 }
 0x34c   :  { %333 = vrot.lane.b32.xlu1 %v1855_v43, %s1775_s27 }
 0x350   :  { %345 = vrot.lane.b32.xlu1 %v1855_v43, %s1776_s28 }
 0x354   :  { %323 = vrot.lane.b32.xlu1 %v1859_v44, %s1774_s1 }
 0x358   :  { %335 = vrot.lane.b32.xlu1 %v1859_v44, %s1775_s27 }
 0x35c   :  { %325 = vrot.lane.b32.xlu1 %v1863_v45, %s1774_s1 }
 0x360   :  { %347 = vrot.lane.b32.xlu1 %v1859_v44, %s1776_s28 }
 0x364   :  { %349 = vrot.lane.b32.xlu1 %v1863_v45, %s1776_s28 }
 0x368   :  { %1668 = vrot.lane.b32.xlu1 %v1667_v3, %s1777_s29 }
 0x36c   :  { %1673 = vrot.lane.b32.xlu1 %v1672_v11, %s1777_s29 }
 0x370   :  { %1678 = vrot.lane.b32.xlu1 %v1677_v16, %s1777_s29 }
 0x374   :  { %1683 = vrot.lane.b32.xlu1 %v1682_v20, %s1777_s29 }
 0x3ae   :  { %v320_v21 = vpop.permute.xlu1 %319 }
 0x3af   :  { %v356_v29 = vsel %vm2365_vm13, %v1851_v42, %v320_v21 }
 0x3b2   :  { %v332_v22 = vpop.permute.xlu1 %331 }
 0x3b3   :  { %v360_v30 = vsel %vm2366_vm4, %v356_v29, %v332_v22 }
 0x3b6   :  { %v344_v23 = vpop.permute.xlu1 %343 }
 0x3b7   :  { %v365_v34 = vsel %vm2364_vm15, %v360_v30, %v344_v23 }
 0x3b8   :  { %v369_v42 = vmul.f32 %v1974_v32, %v365_v34 }
 0x3ba   :  { %v322_v26 = vpop.permute.xlu1 %321  ;;  %v338_v63 = vpop.permute.xlu0 %337 }
 0x3bb   :  { %v357_v36 = vsel %vm2365_vm13, %v1855_v43, %v322_v26  ;;  %v150_v43 = vshra.s32 %v1883_v48, 3  ;;  %v1999_v48 = vsel %vm156_vm14, 1.0, %v1771_v9  ;;  %vm2362_vm14 = vmpackc.low %vm1935_vm10, %vm1931_vm9 }
 0x3bd   :  { %vm155_vm2 = vcmp.eq.s32.totalorder %v150_v43, %v152_v25 }
 0x3be   :  { %v334_v28 = vpop.permute.xlu1 %333  ;;  %v1995_v2 = vsel %vm155_vm2, 1.0, %v1771_v9  ;;  %vm2360_vm2 = vmpackc.low %vm1917_vm8, %vm1913_vm7 }
 0x3bf   :  { %v361_v40 = vsel %vm2366_vm4, %v357_v36, %v334_v28 }
 0x3c2   :  { %v346_v41 = vpop.permute.xlu1 %345 }
 0x3c3   :  { %v366_v50 = vsel %vm2364_vm15, %v361_v40, %v346_v41 }
 0x3c4   :  { %v370_v51 = vmul.f32 %v1980_v39, %v366_v50 }
 0x3c6   :  { %v374_v52 = vpack.c.bf16 %v370_v51, %v369_v42  ;;  %v324_v53 = vpop.permute.xlu1 %323 }
 0x3c7   :  { %v358_v60 = vsel %vm2365_vm13, %v1859_v44, %v324_v53 }
 0x3c8   :  { %1502 = vmatpush3.bf16.msra.mxu1 %v374_v52  ;;  %v1778_v52 = vmov 1.0|1.0  }
 0x3c9   :  { %1503 = vmatprep.subr.bf16.mxu1 %v1771_v9  ;;  %1510 = vmatpush3.bf16.msk.msra.mxu0 %vm2363_vm1, %v1778_v52 }
 0x3ca   :  { %v336_v54 = vpop.permute.xlu1 %335  ;;  %1511 = vmatprep.subr.bf16.mxu0 %v1771_v9 }
 0x3cb   :  { %v362_v1 = vsel %vm2366_vm4, %v358_v60, %v336_v54 }
 0x3cd   :  { %1512 = vmatpush3.bf16.msk.msra.mxu0 %vm2360_vm2, %v1778_v52  ;;  %vm2361_vm2 = vmpackc.low %vm1950_vm12, %vm1946_vm11 }
 0x3ce   :  { %v326_v57 = vpop.permute.xlu1 %325  ;;  %1513 = vmatprep.subr.bf16.mxu0 %v1771_v9 }
 0x3cf   :  { %v359_v0 = vsel %vm2365_vm13, %v1863_v45, %v326_v57  ;;  %v138_v57 = vand.u32 15, %v1818_v17 }
 0x3d0   :  { %v363_v49 = vsel %vm2366_vm4, %v359_v0, %v338_v63 }
 0x3d1   :  { %1514 = vmatpush3.bf16.msk.msra.mxu0 %vm2362_vm14, %v1778_v52  ;;  %v141_v43 = vshra.s32 %v138_v57, 3  ;;  %vm140_vm1 = vcmp.le.s32.totalorder %v138_v57, %v1878_v47 }
 0x3d2   :  { %v348_v59 = vpop.permute.xlu1 %347  ;;  %1515 = vmatprep.subr.bf16.mxu0 %v1771_v9 }
 0x3d3   :  { %v367_v3 = vsel %vm2364_vm15, %v362_v1, %v348_v59  ;;  %vm144_vm14 = vcmp.eq.s32.totalorder %v141_v43, %v142_v24 }
 0x3d4   :  { %v371_v44 = vmul.f32 %v1995_v2, %v367_v3 }
 0x3d5   :  { %1516 = vmatpush3.bf16.msk.msra.mxu0 %vm2361_vm2, %v1778_v52  ;;  %vm139_vm2 = vcmp.le.s32.totalorder %v138_v57, %v1873_v46 }
 0x3d6   :  { %v350_v4 = vpop.permute.xlu1 %349  ;;  %1533 = vmatprep.subr.bf16.mxu0 %v1771_v9  ;;  %vm2111_vm13 = vmand %vm139_vm2, %vm144_vm14 }
 0x3d7   :  { %v368_v5 = vsel %vm2364_vm15, %v363_v49, %v350_v4  ;;  %vm145_vm15 = vcmp.eq.s32.totalorder %v141_v43, %v143_v27 }
 0x3d8   :  { %v372_v8 = vmul.f32 %v1999_v48, %v368_v5 }
 0x3da   :  { %v375_v45 = vpack.c.bf16 %v372_v8, %v371_v44  ;;  %v2005_v10 = vpop.permute.xlu1 %1668 }
 0x3db   :  { %v1671_v11 = vunpack.i.h.bf16 %v2005_v10  ;;  %v1670_v12 = vunpack.i.l.bf16 %v2005_v10 }
 0x3dc   :  { %1504 = vmatpush3.bf16.msra.mxu1 %v375_v45 }
 0x3dd   :  { %v512_v13 = vmul.f32 %v1671_v11, %v1845_v37  ;;  %v511_v16 = vmul.f32 %v1670_v12, %v1841_v35  ;;  %1521 = vmatprep.subr.bf16.mxu1 %v1771_v9 }
 0x3de   :  { %v2016_v18 = vpop.permute.xlu1 %1673 }
 0x3df   :  { %v1676_v19 = vunpack.i.h.bf16 %v2016_v18  ;;  %v1675_v20 = vunpack.i.l.bf16 %v2016_v18  ;;  %1506 = vmatmul.mubr.msk.bf16.vlgmr.msra.gmra.mrb[8].mxu1 %vm2366_vm4, %v373_v38  ;;  %v519_v21 = vpack.c.bf16 %v512_v13, %v511_v16 }
 0x3e0   :  { %1529 = vmatprep.mubr.msk.bf16.mxu1 %vm2367_vm3, %v1771_v9  ;;  %vm2115_vm3 = vmand %vm140_vm1, %vm145_vm15  ;;  %vm2391_vm15 = vcmask 523264  }
 0x3e1   :  { %v514_v22 = vmul.f32 %v1676_v19, %v1845_v37  ;;  %v513_v23 = vmul.f32 %v1675_v20, %v1841_v35  ;;  %527 = vrot.lane.b32.xlu1 %v519_v21, %s1777_s29  ;;  %vm2392_vm1 = vmmov %vm2391_vm15 }
 0x3e2   :  { %v2033_v25 = vpop.permute.xlu1 %1678 }
 0x3e3   :  { %v1681_v26 = vunpack.i.h.bf16 %v2033_v25  ;;  %v1680_v38 = vunpack.i.l.bf16 %v2033_v25  ;;  %v520_v28 = vpack.c.bf16 %v514_v22, %v513_v23 }
 0x3e5   :  { %v516_v29 = vmul.f32 %v1681_v26, %v1845_v37  ;;  %v515_v30 = vmul.f32 %v1680_v38, %v1841_v35  ;;  %529 = vrot.lane.b32.xlu1 %v520_v28, %s1777_s29 }
 0x3e6   :  { %v2044_v34 = vpop.permute.xlu1 %1683 }
 0x3e7   :  { %v1686_v36 = vunpack.i.h.bf16 %v2044_v34  ;;  %v1685_v40 = vunpack.i.l.bf16 %v2044_v34  ;;  %v521_v41 = vpack.c.bf16 %v516_v29, %v515_v30 }
 0x3e9   :  { %v518_v50 = vmul.f32 %v1686_v36, %v1845_v37  ;;  %v517_v42 = vmul.f32 %v1685_v40, %v1841_v35  ;;  %531 = vrot.lane.b32.xlu1 %v521_v41, %s1777_s29 }
 0x3eb   :  { %v522_v51 = vpack.c.bf16 %v518_v50, %v517_v42 }
 0x3ed   :  { %533 = vrot.lane.b32.xlu1 %v522_v51, %s1777_s29 }
 0x453   :  { %v528_v35 = vpop.permute.xlu1 %527 }
 0x454   :  { %1522 = vmatpush3.bf16.msra.mxu1 %v528_v35 }
 0x455   :  { %1523 = vmatprep.subr.bf16.mxu1 %v1771_v9 }
 0x457   :  { %v530_v37 = vpop.permute.xlu1 %529 }
 0x458   :  { %1524 = vmatpush3.bf16.msra.mxu1 %v530_v37 }
 0x459   :  { %1525 = vmatprep.subr.bf16.mxu1 %v1771_v9 }
 0x45b   :  { %v532_v53 = vpop.permute.xlu1 %531 }
 0x45c   :  { %1526 = vmatpush3.bf16.msra.mxu1 %v532_v53 }
 0x45d   :  { %1527 = vmatprep.subr.bf16.mxu1 %v1771_v9 }
 0x45f   :  { %v534_v54 = vpop.permute.xlu1 %533 }
 0x460   :  { %1528 = vmatpush3.bf16.msra.mxu1 %v534_v54 }
 0x461   :  { %1541 = vmatprep.subr.bf16.mxu1 %v1771_v9 }
 0x4b2   :  { %v413_v59 = vpop.f32.mrb[8].mxu1 }
 0x4b3   :  { %vm420_vm4 = vcmp.ne.f32.partialorder %v413_v59, 0.0  ;;  %v1507_v60 = vpop.f32.mrb[9].mxu1 }
 0x4b4   :  { %vm422_vm0 = vmand %vm2111_vm13, %vm420_vm4  ;;  %v416_v24 = vpop.f32.mrb[10].mxu1  ;;  %vm2393_vm4 = vmmov 0  }
 0x4b5   :  { %v424_v63 = vsel %vm422_vm0, %v413_v59, -inf  ;;  %vm421_vm11 = vcmp.ne.f32.partialorder %v416_v24, 0.0  ;;  %v1508_v0 = vpop.f32.mrb[11].mxu1  ;;  %vm2394_vm0 = vcmask 261120  }
 0x4b6   :  { %v426_v47 = vmul.f32 1.442695, %v424_v63  ;;  %vm423_vm2 = vmand %vm2115_vm3, %vm421_vm11  ;;  %v207_v63 = vld [vmem:[#allocation2 + $0x28] sm:$0xff] }
 0x4b7   :  { %v425_v27 = vsel %vm423_vm2, %v416_v24, -inf  ;;  %vm2395_vm11 = vmmov %vm2394_vm0  ;;  %v206_v24 = vld [vmem:[#allocation2 + $0x20] sm:$0xff] }
 0x4b8   :  { %v428_v1 = vmul.f32 1.442695, %v425_v27  ;;  %1687 = vpow2.f32 %v426_v47  ;;  %vm2396_vm14 = vmmov %vm2394_vm0  ;;  %v626_v0 = vpack.c.bf16 %v207_v63, %v206_v24  ;;  %v208_v47 = vld [vmem:[#allocation2 + $0x30] sm:$0xff]  ;;  %v209_v27 = vld [vmem:[#allocation2 + $0x38] sm:$0xff]  ;;  %v621_v24 = vsub.s32 1, %v1873_v46 }
 0x4b9   :  { %vm2397_vm2 = vmmov %vm2394_vm0 }
 0x4ba   :  { %1689 = vpow2.f32 %v428_v1  ;;  %v627_v1 = vpack.c.bf16 %v209_v27, %v208_v47 }
 0x4c2   :  { %v1688_v3 = vpop.eup %1687 }
 0x4c4   :  { %v1690_v49 = vpop.eup %1689 }
 0x4c5   :  { %v430_v4 = vpack.c.bf16 %v1690_v49, %v1688_v3  ;;  %v210_v3 = vld [vmem:[#allocation2 + $0x40] sm:$0xff]  ;;  %v211_v49 = vld [vmem:[#allocation2 + $0x48] sm:$0xff] }
 0x4c7   :  { %1518 = vmatmul.mubr.msk.bf16.vlgmr.msra.gmra.mrb[0].mxu0 %vm2391_vm15, %v430_v4  ;;  %1530 = vmatmul.mubr.msk.bf16.vlgmr.msra.gmra.mrb[12].mxu1 %vm2392_vm1, %v430_v4  ;;  %v212_v4 = vld [vmem:[#allocation2 + $0x50] sm:$0xff]  ;;  %vm2398_vm15 = vmmov %vm2394_vm0 }
 0x4c8   :  { %1537 = vmatprep.mubr.msk.bf16.mxu0 %vm2393_vm4, %v1771_v9  ;;  %1557 = vmatprep.mubr.msk.bf16.mxu1 %vm2393_vm4, %v1771_v9  ;;  %vm2399_vm1 = vmmov %vm2394_vm0 }
 0x4c9   :  { %1534 = vmatpush3.bf16.msra.mxu0 %v626_v0 }
 0x4ca   :  { %1535 = vmatprep.subr.bf16.mxu0 %v1771_v9 }
 0x4cd   :  { %1536 = vmatpush3.bf16.msra.mxu0 %v627_v1 }
 0x4ce   :  { %1561 = vmatprep.subr.bf16.mxu0 %v1771_v9 }
 0x59a   :  { %v472_v5 = vpop.f32.mrb[0].mxu0  ;;  %v573_v44 = vpop.f32.mrb[12].mxu1 }
 0x59b   :  { %1691 = vrcp.f32 %v472_v5  ;;  %v1519_v8 = vpop.f32.mrb[1].mxu0  ;;  %v1531_v45 = vpop.f32.mrb[13].mxu1  ;;  %v675_v5 = vpack.c.bf16 %v211_v49, %v210_v3 }
 0x59c   :  { %v475_v13 = vpop.f32.mrb[2].mxu0  ;;  %v576_v16 = vpop.f32.mrb[14].mxu1  ;;  %v214_v45 = vld [vmem:[#allocation2 + $0x60] sm:$0xff] }
 0x59d   :  { %1693 = vrcp.f32 %v475_v13  ;;  %v1520_v21 = vpop.f32.mrb[3].mxu0  ;;  %v1532_v22 = vpop.f32.mrb[15].mxu1  ;;  %1542 = vmatpush3.bf16.msra.mxu1 %v675_v5  ;;  %v215_v13 = vld [vmem:[#allocation2 + $0x68] sm:$0xff] }
 0x59e   :  { %1543 = vmatprep.subr.bf16.mxu1 %v1771_v9  ;;  %v216_v21 = vld [vmem:[#allocation2 + $0x70] sm:$0xff]  ;;  %v217_v22 = vld [vmem:[#allocation2 + $0x78] sm:$0xff] }
 0x5a5   :  { %v1692_v23 = vpop.eup %1691 }
 0x5a6   :  { %v582_v28 = vmul.f32 %v1692_v23, %v573_v44  ;;  %v213_v44 = vld [vmem:[#allocation2 + $0x58] sm:$0xff]  ;;  %v678_v23 = vpack.c.bf16 %v217_v22, %v216_v21 }
 0x5a7   :  { %v1694_v29 = vpop.eup %1693  ;;  %v676_v8 = vpack.c.bf16 %v213_v44, %v212_v4 }
 0x5a8   :  { %v583_v30 = vmul.f32 %v1694_v29, %v576_v16  ;;  %v584_v41 = vadd.f32 %v582_v28, %v1834_v33  ;;  %v677_v16 = vpack.c.bf16 %v215_v13, %v214_v45  ;;  %v218_v28 = vld [vmem:[#allocation2 + $0x80] sm:$0xff]  ;;  %v219_v29 = vld [vmem:[#allocation2 + $0x88] sm:$0xff]  ;;  %v225_v13 = vld [vmem:[#allocation2 + $0xb8] sm:$0xff] }
 0x5a9   :  { %1544 = vmatpush3.bf16.msra.mxu1 %v676_v8  ;;  %v222_v8 = vld [vmem:[#allocation2 + $0xa0] sm:$0xff]  ;;  %v223_v45 = vld [vmem:[#allocation2 + $0xa8] sm:$0xff] }
 0x5aa   :  { %v586_v50 = vsel %vm2394_vm0, %v584_v41, 0.0  ;;  %v585_v42 = vadd.f32 %v583_v30, %v1832_v31  ;;  %1545 = vmatprep.subr.bf16.mxu1 %v1771_v9  ;;  %v679_v30 = vpack.c.bf16 %v219_v29, %v218_v28 }
 0x5ab   :  { %587 = vadd.xlane.f32.xlu1 %v586_v50  ;;  %v221_v50 = vld [vmem:[#allocation2 + $0x98] sm:$0xff] }
 0x5ac   :  { %v589_v51 = vsel %vm2395_vm11, %v585_v42, 0.0  ;;  %vm2400_vm11 = vmmov %vm2394_vm0 }
 0x5ad   :  { %590 = vadd.xlane.f32.xlu0 %v589_v51  ;;  %1546 = vmatpush3.bf16.msra.mxu1 %v677_v16 }
 0x5ae   :  { %1547 = vmatprep.subr.bf16.mxu1 %v1771_v9 }
 0x5b1   :  { %1548 = vmatpush3.bf16.msra.mxu1 %v678_v23 }
 0x5b2   :  { %1549 = vmatprep.subr.bf16.mxu1 %v1771_v9 }
 0x5b5   :  { %1550 = vmatpush3.bf16.msra.mxu1 %v679_v30 }
 0x5b6   :  { %1551 = vmatprep.subr.bf16.mxu1 %v1771_v9 }
 0x638   :  { %v588_v35 = vpop.xlane.xlu1 %587 }
 0x639   :  { %v593_v37 = vmul.f32 0.03125, %v588_v35 }
 0x63a   :  { %v591_v53 = vpop.xlane.xlu0 %590 }
 0x63b   :  { %v595_v54 = vsub.f32 %v584_v41, %v593_v37  ;;  %v594_v57 = vmul.f32 0.03125, %v591_v53  ;;  %v220_v41 = vld [vmem:[#allocation2 + $0x90] sm:$0xff] }
 0x63d   :  { %v2133_v43 = vsub.f32 %v585_v42, %v594_v57  ;;  %v597_v59 = vmul.f32 %v595_v54, %v595_v54  ;;  %v680_v42 = vpack.c.bf16 %v221_v50, %v220_v41 }
 0x63f   :  { %v599_v60 = vsel %vm2396_vm14, %v597_v59, 0.0  ;;  %v598_v33 = vmul.f32 %v2133_v43, %v2133_v43  ;;  %1552 = vmatpush3.bf16.msra.mxu1 %v680_v42  ;;  %vm2401_vm14 = vmmov %vm2394_vm0 }
 0x640   :  { %600 = vadd.xlane.f32.xlu1 %v599_v60  ;;  %1553 = vmatprep.subr.bf16.mxu1 %v1771_v9  ;;  %v615_v60 = vsub.s32 0, %v1873_v46 }
 0x641   :  { %v602_v31 = vsel %vm2397_vm2, %v598_v33, 0.0  ;;  %v2148_v33 = vld [vmem:[#allocation2 + $0xc0] sm:$0xff]  ;;  %vm2402_vm2 = vmmov %vm2394_vm0 }
 0x642   :  { %603 = vadd.xlane.f32.xlu0 %v602_v31  ;;  %v616_v31 = vrot.slane %v2148_v33, %v615_v60  ;;  %v622_v3 = vrot.slane %v2148_v33, %v621_v24 }
 0x6cd   :  { %v601_v51 = vpop.xlane.xlu1 %600 }
 0x6ce   :  { %v605_v35 = vmul.f32 0.03125, %v601_v51 }
 0x6cf   :  { %v604_v37 = vpop.xlane.xlu0 %603 }
 0x6d0   :  { %v607_v53 = vadd.f32 1e-05, %v605_v35  ;;  %v606_v57 = vmul.f32 0.03125, %v604_v37 }
 0x6d2   :  { %1695 = vrsqrt.f32 %v607_v53  ;;  %v608_v59 = vadd.f32 1e-05, %v606_v57 }
 0x6d4   :  { %1697 = vrsqrt.f32 %v608_v59 }
 0x6dc   :  { %v1696_v63 = vpop.eup %1695 }
 0x6dd   :  { %v611_v0 = vmul.f32 %v1696_v63, %v595_v54  ;;  %v681_v54 = vpack.c.bf16 %v223_v45, %v222_v8  ;;  %v765_v8 = vld [vmem:[#allocation2 + $0xd0] sm:$0xff] }
 0x6de   :  { %v1698_v47 = vpop.eup %1697 }
 0x6df   :  { %v617_v27 = vmul.f32 %v616_v31, %v611_v0  ;;  %v612_v1 = vmul.f32 %v1698_v47, %v2133_v43  ;;  %1554 = vmatpush3.bf16.msra.mxu1 %v681_v54  ;;  %v224_v43 = vld [vmem:[#allocation2 + $0xb0] sm:$0xff]  ;;  %v766_v54 = vld [vmem:[#allocation2 + $0xd8] sm:$0xff] }
 0x6e0   :  { %1555 = vmatprep.subr.bf16.mxu1 %v1771_v9  ;;  %v682_v16 = vpack.c.bf16 %v225_v13, %v224_v43  ;;  %v767_v43 = vld [vmem:[#allocation2 + $0xe0] sm:$0xff] }
 0x6e1   :  { %v618_v49 = vmul.f32 %v616_v31, %v612_v1  ;;  %v623_v4 = vadd.f32 %v622_v3, %v617_v27  ;;  %v791_v13 = vpack.c.bf16 %v767_v43, %v766_v54 }
 0x6e3   :  { %v624_v5 = vadd.f32 %v622_v3, %v618_v49  ;;  %1556 = vmatpush3.bf16.msra.mxu1 %v682_v16 }
 0x6e4   :  { %1589 = vmatprep.subr.bf16.mxu1 %v1771_v9 }
 0x6e5   :  { %v625_v44 = vpack.c.bf16 %v624_v5, %v623_v4 }
 0x6e7   :  { %1538 = vmatmul.mubr.msk.bf16.vlgmr.msra.gmra.mrb[4].mxu0 %vm2398_vm15, %v625_v44  ;;  %v764_v44 = vld [vmem:[#allocation2 + $0xc8] sm:$0xff]  ;;  %vm2403_vm15 = vcmask 130048  }
 0x6e8   :  { %1565 = vmatprep.mubr.msk.bf16.mxu0 %vm2393_vm4, %v1771_v9  ;;  %v790_v45 = vpack.c.bf16 %v765_v8, %v764_v44 }
 0x6ea   :  { %1562 = vmatpush3.bf16.msra.mxu0 %v790_v45 }
 0x6eb   :  { %1563 = vmatprep.subr.bf16.mxu0 %v1771_v9 }
 0x6ee   :  { %1564 = vmatpush3.bf16.msra.mxu0 %v791_v13 }
 0x6ef   :  { %1569 = vmatprep.subr.bf16.mxu0 %v1771_v9 }
 0x7ba   :  { %v665_v21 = vpop.f32.mrb[4].mxu0 }
 0x7bb   :  { %v1539_v22 = vpop.f32.mrb[5].mxu0  ;;  %v672_v28 = vmax.f32 %v665_v21, 0.0 }
 0x7bc   :  { %v668_v23 = vpop.f32.mrb[6].mxu0 }
 0x7bd   :  { %v673_v29 = vmax.f32 %v668_v23, 0.0  ;;  %v1540_v30 = vpop.f32.mrb[7].mxu0 }
 0x7be   :  { %v754_v30 = vsub.s32 2, %v1873_v46 }
 0x7bf   :  { %v674_v41 = vpack.c.bf16 %v673_v29, %v672_v28 }
 0x7c1   :  { %1558 = vmatmul.mubr.bf16.vlgmr.msra.gmra.mrb[16].mxu1 %v674_v41  ;;  %v755_v41 = vrot.slane %v2148_v33, %v754_v30 }
 0x7c2   :  { %1597 = vmatprep.mubr.msk.bf16.mxu1 %vm2393_vm4, %v1771_v9 }
 0x894   :  { %v717_v50 = vpop.f32.mrb[16].mxu1 }
 0x895   :  { %v724_v42 = vadd.f32 %v717_v50, %v623_v4  ;;  %v1559_v51 = vpop.f32.mrb[17].mxu1  ;;  %v760_v50 = vsub.s32 3, %v1873_v46 }
 0x896   :  { %v720_v35 = vpop.f32.mrb[18].mxu1 }
 0x897   :  { %v725_v37 = vadd.f32 %v720_v35, %v624_v5  ;;  %v1560_v53 = vpop.f32.mrb[19].mxu1  ;;  %v726_v57 = vsel %vm2399_vm1, %v724_v42, 0.0  ;;  %vm2404_vm1 = vmmov %vm2394_vm0 }
 0x898   :  { %727 = vadd.xlane.f32.xlu1 %v726_v57  ;;  %v761_v57 = vrot.slane %v2148_v33, %v760_v50 }
 0x899   :  { %v729_v59 = vsel %vm2394_vm0, %v725_v37, 0.0  ;;  %vm2405_vm0 = vcmask 392192  }
 0x89a   :  { %730 = vadd.xlane.f32.xlu0 %v729_v59 }
 0x925   :  { %v728_v31 = vpop.xlane.xlu1 %727 }
 0x926   :  { %v732_v63 = vmul.f32 0.03125, %v728_v31 }
 0x927   :  { %v731_v0 = vpop.xlane.xlu0 %730 }
 0x928   :  { %v734_v47 = vsub.f32 %v724_v42, %v732_v63  ;;  %v733_v27 = vmul.f32 0.03125, %v731_v0 }
 0x92a   :  { %v735_v1 = vsub.f32 %v725_v37, %v733_v27  ;;  %v736_v3 = vmul.f32 %v734_v47, %v734_v47 }
 0x92c   :  { %v738_v49 = vsel %vm2400_vm11, %v736_v3, 0.0  ;;  %v737_v4 = vmul.f32 %v735_v1, %v735_v1  ;;  %vm2406_vm11 = vmmov %vm2403_vm15 }
 0x92d   :  { %739 = vadd.xlane.f32.xlu1 %v738_v49 }
 0x92e   :  { %v741_v5 = vsel %vm2401_vm14, %v737_v4, 0.0  ;;  %vm2407_vm14 = vmmov %vm2404_vm1 }
 0x92f   :  { %742 = vadd.xlane.f32.xlu0 %v741_v5 }
 0x9ba   :  { %v740_v16 = vpop.xlane.xlu1 %739 }
 0x9bb   :  { %v744_v21 = vmul.f32 0.03125, %v740_v16 }
 0x9bc   :  { %v743_v22 = vpop.xlane.xlu0 %742 }
 0x9bd   :  { %v746_v23 = vadd.f32 1e-05, %v744_v21  ;;  %v745_v28 = vmul.f32 0.03125, %v743_v22 }
 0x9bf   :  { %1699 = vrsqrt.f32 %v746_v23  ;;  %v747_v29 = vadd.f32 1e-05, %v745_v28 }
 0x9c1   :  { %1701 = vrsqrt.f32 %v747_v29 }
 0x9c9   :  { %v1700_v42 = vpop.eup %1699 }
 0x9ca   :  { %v750_v51 = vmul.f32 %v1700_v42, %v734_v47 }
 0x9cb   :  { %v1702_v35 = vpop.eup %1701 }
 0x9cc   :  { %v756_v37 = vmul.f32 %v755_v41, %v750_v51  ;;  %v751_v53 = vmul.f32 %v1702_v35, %v735_v1 }
 0x9ce   :  { %v757_v59 = vmul.f32 %v755_v41, %v751_v53  ;;  %v2179_v31 = vadd.f32 %v761_v57, %v756_v37 }
 0x9d0   :  { %v2181_v63 = vadd.f32 %v761_v57, %v757_v59 }
 0x9d2   :  { %v789_v0 = vpack.c.bf16 %v2181_v63, %v2179_v31 }
 0x9d4   :  { %1566 = vmatmul.mubr.msk.bf16.vlgmr.msra.gmra.mrb[8].mxu0 %vm2402_vm2, %v789_v0  ;;  %vm2408_vm2 = vmmov %vm2405_vm0 }
 0x9d5   :  { %1573 = vmatprep.mubr.msk.bf16.mxu0 %vm2393_vm4, %v1771_v9 }
 0xaa7   :  { %v2188_v47 = vpop.f32.mrb[8].mxu0 }
 0xaa8   :  { %838 = vrot.lane.b32.xlu1 %v2188_v47, %s1773_s0  ;;  %v1567_v27 = vpop.f32.mrb[9].mxu0  ;;  %v1034_v1 = vmul.f32 %v1670_v12, %v2188_v47  ;;  %v1036_v3 = vmul.f32 %v1675_v20, %v2188_v47  ;;  %v1038_v49 = vmul.f32 %v1680_v38, %v2188_v47  ;;  %v1040_v38 = vmul.f32 %v1685_v40, %v2188_v47 }
 0xaa9   :  { %v2192_v33 = vpop.f32.mrb[10].mxu0 }
 0xaaa   :  { %v932_v4 = vpack.c.bf16 %v2192_v33, %v2188_v47  ;;  %840 = vrot.lane.b32.xlu0 %v2192_v33, %s1773_s0  ;;  %v1568_v5 = vpop.f32.mrb[11].mxu0  ;;  %v1035_v44 = vmul.f32 %v1671_v11, %v2192_v33  ;;  %v1037_v12 = vmul.f32 %v1676_v19, %v2192_v33  ;;  %v1039_v20 = vmul.f32 %v1681_v26, %v2192_v33 }
 0xaab   :  { %v1041_v8 = vmul.f32 %v1686_v36, %v2192_v33 }
 0xaac   :  { %v1042_v45 = vpack.c.bf16 %v1035_v44, %v1034_v1  ;;  %v1043_v54 = vpack.c.bf16 %v1037_v12, %v1036_v3  ;;  %v1044_v10 = vpack.c.bf16 %v1039_v20, %v1038_v49 }
 0xaad   :  { %v1045_v11 = vpack.c.bf16 %v1041_v8, %v1040_v38 }
 0xb1a   :  { %v839_v43 = vpop.permute.xlu1 %838 }
 0xb1b   :  { %844 = vxpose.xlu1.b32.start [1/2] (short) (narrow) %v839_v43, 32 }
 0xb1c   :  { %v841_v18 = vpop.permute.xlu0 %840 }
 0xb1f   :  { %845 = vxpose.xlu1.b32.end [2/2] (short) (narrow) %v841_v18, 32 }
 0xb9b   :  { %v860_v19 = vpop.trf.xlu1 }
 0xb9c   :  { %880 = vrot.lane.b32.xlu0 %v860_v19, %s1774_s1 }
 0xb9f   :  { %v861_v25 = vpop.trf.xlu1 }
 0xba0   :  { %892 = vrot.lane.b32.xlu0 %v860_v19, %s1775_s27 }
 0xba3   :  { %v862_v26 = vpop.trf.xlu1 }
 0xba4   :  { %904 = vrot.lane.b32.xlu0 %v860_v19, %s1776_s28  ;;  %908 = vrot.lane.b32.xlu1 %v862_v26, %s1776_s28 }
 0xba7   :  { %v863_v34 = vpop.trf.xlu1 }
 0xba8   :  { %882 = vrot.lane.b32.xlu0 %v861_v25, %s1774_s1 }
 0xbac   :  { %894 = vrot.lane.b32.xlu0 %v861_v25, %s1775_s27 }
 0xbb0   :  { %906 = vrot.lane.b32.xlu0 %v861_v25, %s1776_s28 }
 0xbb4   :  { %884 = vrot.lane.b32.xlu0 %v862_v26, %s1774_s1 }
 0xbb8   :  { %896 = vrot.lane.b32.xlu0 %v862_v26, %s1775_s27 }
 0xbbc   :  { %886 = vrot.lane.b32.xlu0 %v863_v34, %s1774_s1 }
 0xbc0   :  { %898 = vrot.lane.b32.xlu0 %v863_v34, %s1775_s27 }
 0xbc4   :  { %910 = vrot.lane.b32.xlu0 %v863_v34, %s1776_s28 }
 0xbc8   :  { %1050 = vrot.lane.b32.xlu0 %v1042_v45, %s1777_s29 }
 0xbcc   :  { %1052 = vrot.lane.b32.xlu0 %v1043_v54, %s1777_s29 }
 0xbd0   :  { %1054 = vrot.lane.b32.xlu0 %v1044_v10, %s1777_s29 }
 0xbd4   :  { %1056 = vrot.lane.b32.xlu0 %v1045_v11, %s1777_s29 }
 0xc0e   :  { %v881_v36 = vpop.permute.xlu0 %880 }
 0xc0f   :  { %v916_v22 = vsel %vm2403_vm15, %v860_v19, %v881_v36  ;;  %vm2409_vm15 = vmmov %vm2406_vm11 }
 0xc12   :  { %v893_v40 = vpop.permute.xlu0 %892 }
 0xc13   :  { %v920_v23 = vsel %vm2404_vm1, %v916_v22, %v893_v40 }
 0xc16   :  { %v905_v13 = vpop.permute.xlu0 %904  ;;  %v909_v49 = vpop.permute.xlu1 %908 }
 0xc17   :  { %v924_v28 = vsel %vm2405_vm0, %v920_v23, %v905_v13 }
 0xc18   :  { %v928_v35 = vmul.f32 %v1974_v32, %v924_v28 }
 0xc1a   :  { %v883_v16 = vpop.permute.xlu0 %882 }
 0xc1b   :  { %v917_v29 = vsel %vm2406_vm11, %v861_v25, %v883_v16 }
 0xc1e   :  { %v895_v21 = vpop.permute.xlu0 %894 }
 0xc1f   :  { %v921_v41 = vsel %vm2407_vm14, %v917_v29, %v895_v21  ;;  %vm2410_vm14 = vmmov %vm2404_vm1 }
 0xc22   :  { %v907_v42 = vpop.permute.xlu0 %906 }
 0xc23   :  { %v925_v51 = vsel %vm2408_vm2, %v921_v41, %v907_v42  ;;  %vm2411_vm2 = vmmov %vm2405_vm0 }
 0xc24   :  { %v929_v37 = vmul.f32 %v1980_v39, %v925_v51 }
 0xc26   :  { %v933_v53 = vpack.c.bf16 %v929_v37, %v928_v35  ;;  %v885_v57 = vpop.permute.xlu0 %884 }
 0xc27   :  { %v918_v27 = vsel %vm2409_vm15, %v862_v26, %v885_v57  ;;  %vm2412_vm15 = vmmov %vm2404_vm1 }
 0xc28   :  { %1570 = vmatpush3.bf16.msra.mxu0 %v933_v53  ;;  %v768_v53 = vld [vmem:[#allocation2 + $0xe8] sm:$0xff] }
 0xc29   :  { %1571 = vmatprep.subr.bf16.mxu0 %v1771_v9 }
 0xc2a   :  { %v897_v59 = vpop.permute.xlu0 %896 }
 0xc2b   :  { %v922_v1 = vsel %vm2404_vm1, %v918_v27, %v897_v59  ;;  %vm2413_vm1 = vmpackc.low %vm1899_vm6, %vm1895_vm5  ;;  %vm2416_vm6 = vnez %v2384_v14  ;;  %v770_v59 = vld [vmem:[#allocation2 + $0xf8] sm:$0xff] }
 0xc2c   :  { %v926_v5 = vsel %vm2405_vm0, %v922_v1, %v909_v49  ;;  %vm2414_vm0 = vmpackc.low %vm1917_vm8, %vm1913_vm7 }
 0xc2d   :  { %v930_v20 = vmul.f32 %v1995_v2, %v926_v5  ;;  %vm2415_vm5 = vmpackc.low %vm1935_vm10, %vm1931_vm9 }
 0xc2e   :  { %v887_v0 = vpop.permute.xlu0 %886  ;;  %vm2417_vm7 = vmpackc.low %vm1950_vm12, %vm2416_vm6  ;;  %vm2418_vm12 = vcmask 523264  }
 0xc2f   :  { %v919_v44 = vsel %vm2406_vm11, %v863_v34, %v887_v0  ;;  %v771_v0 = vld [vmem:[#allocation2 + $0x100] sm:$0xff] }
 0xc30   :  { %v1149_v27 = vpack.c.bf16 %v771_v0, %v770_v59 }
 0xc32   :  { %v899_v3 = vpop.permute.xlu0 %898 }
 0xc33   :  { %v923_v32 = vsel %vm2410_vm14, %v919_v44, %v899_v3  ;;  %vm2419_vm14 = vmmov %vm2418_vm12 }
 0xc36   :  { %v911_v39 = vpop.permute.xlu0 %910 }
 0xc37   :  { %v927_v12 = vsel %vm2411_vm2, %v923_v32, %v911_v39  ;;  %v2312_v39 = vld [vmem:[#allocation2 + $0x188] sm:$0xff] }
 0xc38   :  { %v931_v38 = vmul.f32 %v1999_v48, %v927_v12 }
 0xc3a   :  { %v934_v8 = vpack.c.bf16 %v931_v38, %v930_v20  ;;  %v1051_v45 = vpop.permute.xlu0 %1050  ;;  %v1138_v20 = vrot.slane %v2312_v39, %v615_v60 }
 0xc3b   :  { %1590 = vmatpush3.bf16.msra.mxu1 %v1051_v45 }
 0xc3c   :  { %1572 = vmatpush3.bf16.msra.mxu0 %v934_v8  ;;  %1591 = vmatprep.subr.bf16.mxu1 %v1771_v9 }
 0xc3d   :  { %1577 = vmatprep.subr.bf16.mxu0 %v1771_v9 }
 0xc3e   :  { %v1053_v54 = vpop.permute.xlu0 %1052 }
 0xc3f   :  { %1574 = vmatmul.mubr.msk.bf16.vlgmr.msra.gmra.mrb[12].mxu0 %vm2412_vm15, %v932_v4  ;;  %1592 = vmatpush3.bf16.msra.mxu1 %v1053_v54 }
 0xc40   :  { %1593 = vmatprep.subr.bf16.mxu1 %v1771_v9  ;;  %1578 = vmatpush3.bf16.msk.msra.mxu0 %vm2413_vm1, %v1778_v52 }
 0xc41   :  { %1579 = vmatprep.subr.bf16.mxu0 %v1771_v9  ;;  %1585 = vmatprep.mubr.msk.bf16.mxu0 %vm2393_vm4, %v1771_v9 }
 0xc42   :  { %v1055_v2 = vpop.permute.xlu0 %1054 }
 0xc43   :  { %1594 = vmatpush3.bf16.msra.mxu1 %v1055_v2  ;;  %v1144_v2 = vrot.slane %v2312_v39, %v621_v24  ;;  %v777_v24 = vld [vmem:[#allocation2 + $0x130] sm:$0xff] }
 0xc44   :  { %1595 = vmatprep.subr.bf16.mxu1 %v1771_v9  ;;  %1580 = vmatpush3.bf16.msk.msra.mxu0 %vm2414_vm0, %v1778_v52 }
 0xc45   :  { %1581 = vmatprep.subr.bf16.mxu0 %v1771_v9 }
 0xc46   :  { %v1057_v55 = vpop.permute.xlu0 %1056 }
 0xc47   :  { %1596 = vmatpush3.bf16.msra.mxu1 %v1057_v55 }
 0xc48   :  { %1582 = vmatpush3.bf16.msk.msra.mxu0 %vm2415_vm5, %v1778_v52  ;;  %1629 = vmatprep.subr.bf16.mxu1 %v1771_v9 }
 0xc49   :  { %1583 = vmatprep.subr.bf16.mxu0 %v1771_v9 }
 0xc4c   :  { %1584 = vmatpush3.bf16.msk.msra.mxu0 %vm2417_vm7, %v1778_v52 }
 0xc4d   :  { %1601 = vmatprep.subr.bf16.mxu0 %v1771_v9 }
 0xd12   :  { %v972_v56 = vpop.f32.mrb[12].mxu0 }
 0xd13   :  { %vm979_vm8 = vcmp.ne.f32.partialorder %v972_v56, 0.0  ;;  %v1575_v61 = vpop.f32.mrb[13].mxu0 }
 0xd14   :  { %vm981_vm9 = vmand %vm2111_vm13, %vm979_vm8  ;;  %v975_v62 = vpop.f32.mrb[14].mxu0  ;;  %v773_v61 = vld [vmem:[#allocation2 + $0x110] sm:$0xff] }
 0xd15   :  { %v983_v6 = vsel %vm981_vm9, %v972_v56, -inf  ;;  %vm980_vm10 = vcmp.ne.f32.partialorder %v975_v62, 0.0  ;;  %v1576_v7 = vpop.f32.mrb[15].mxu0  ;;  %v772_v56 = vld [vmem:[#allocation2 + $0x108] sm:$0xff] }
 0xd16   :  { %v985_v48 = vmul.f32 1.442695, %v983_v6  ;;  %vm982_vm11 = vmand %vm2115_vm3, %vm980_vm10  ;;  %v1197_v7 = vpack.c.bf16 %v773_v61, %v772_v56 }
 0xd17   :  { %v984_v15 = vsel %vm982_vm11, %v975_v62, -inf  ;;  %vm2420_vm3 = vmmov %vm2412_vm15 }
 0xd18   :  { %v987_v14 = vmul.f32 1.442695, %v984_v15  ;;  %1703 = vpow2.f32 %v985_v48  ;;  %vm2421_vm13 = vmmov %vm2420_vm3  ;;  %v774_v15 = vld [vmem:[#allocation2 + $0x118] sm:$0xff] }
 0xd19   :  { %vm2422_vm2 = vmmov %vm2420_vm3 }
 0xd1a   :  { %1705 = vpow2.f32 %v987_v14  ;;  %vm2423_vm15 = vmmov %vm2422_vm2  ;;  %v775_v14 = vld [vmem:[#allocation2 + $0x120] sm:$0xff] }
 0xd1b   :  { %vm2424_vm1 = vmmov %vm2422_vm2  ;;  %v1198_v60 = vpack.c.bf16 %v775_v14, %v774_v15  ;;  %v1277_v15 = vrot.slane %v2312_v39, %v754_v30 }
 0xd1c   :  { %vm2426_vm0 = vmmov %vm2424_vm1 }
 0xd1d   :  { %vm2427_vm5 = vmmov %vm2426_vm0 }
 0xd1e   :  { %vm2428_vm6 = vmmov %vm2426_vm0 }
 0xd1f   :  { %vm2429_vm7 = vmmov %vm2426_vm0 }
 0xd22   :  { %v1704_v52 = vpop.eup %1703 }
 0xd24   :  { %v1706_v47 = vpop.eup %1705 }
 0xd25   :  { %v989_v33 = vpack.c.bf16 %v1706_v47, %v1704_v52  ;;  %v776_v52 = vld [vmem:[#allocation2 + $0x128] sm:$0xff] }
 0xd26   :  { %v1199_v47 = vpack.c.bf16 %v777_v24, %v776_v52 }
 0xd27   :  { %1586 = vmatmul.mubr.msk.bf16.vlgmr.msra.gmra.mrb[16].mxu0 %vm2418_vm12, %v989_v33  ;;  %1598 = vmatmul.mubr.msk.bf16.vlgmr.msra.gmra.mrb[20].mxu1 %vm2419_vm14, %v989_v33  ;;  %v778_v33 = vld [vmem:[#allocation2 + $0x138] sm:$0xff] }
 0xd28   :  { %1605 = vmatprep.mubr.msk.bf16.mxu0 %vm2393_vm4, %v1771_v9  ;;  %1633 = vmatprep.mubr.msk.bf16.mxu1 %vm2393_vm4, %v1771_v9 }
 0xdfa   :  { %v1027_v58 = vpop.f32.mrb[16].mxu0  ;;  %v1096_v17 = vpop.f32.mrb[20].mxu1 }
 0xdfb   :  { %1707 = vrcp.f32 %v1027_v58  ;;  %v1587_v4 = vpop.f32.mrb[17].mxu0  ;;  %v1599_v10 = vpop.f32.mrb[21].mxu1  ;;  %v779_v58 = vld [vmem:[#allocation2 + $0x140] sm:$0xff] }
 0xdfc   :  { %v1030_v11 = vpop.f32.mrb[18].mxu0  ;;  %v1099_v43 = vpop.f32.mrb[22].mxu1  ;;  %v780_v4 = vld [vmem:[#allocation2 + $0x148] sm:$0xff]  ;;  %v781_v10 = vld [vmem:[#allocation2 + $0x150] sm:$0xff] }
 0xdfd   :  { %1709 = vrcp.f32 %v1030_v11  ;;  %v1588_v18 = vpop.f32.mrb[19].mxu0  ;;  %v1600_v19 = vpop.f32.mrb[23].mxu1  ;;  %v1201_v11 = vpack.c.bf16 %v781_v10, %v780_v4  ;;  %v1403_v4 = vld [vmem:[#allocation2 + $0x200] ss:$0 sm:$0xff] }
 0xdfe   :  { %v783_v18 = vld [vmem:[#allocation2 + $0x160] sm:$0xff] }
 0xe05   :  { %v1708_v25 = vpop.eup %1707 }
 0xe06   :  { %v1105_v26 = vmul.f32 %v1708_v25, %v1096_v17  ;;  %v1200_v17 = vpack.c.bf16 %v779_v58, %v778_v33  ;;  %v784_v25 = vld [vmem:[#allocation2 + $0x168] sm:$0xff] }
 0xe07   :  { %v1710_v34 = vpop.eup %1709 }
 0xe08   :  { %v1106_v36 = vmul.f32 %v1710_v34, %v1099_v43  ;;  %v1107_v40 = vadd.f32 %v1105_v26, %v2179_v31  ;;  %v782_v43 = vld [vmem:[#allocation2 + $0x158] sm:$0xff]  ;;  %v785_v26 = vld [vmem:[#allocation2 + $0x170] sm:$0xff] }
 0xe09   :  { %v1202_v19 = vpack.c.bf16 %v783_v18, %v782_v43  ;;  %v1203_v34 = vpack.c.bf16 %v785_v26, %v784_v25 }
 0xe0a   :  { %v1109_v13 = vsel %vm2420_vm3, %v1107_v40, 0.0  ;;  %v1108_v16 = vadd.f32 %v1106_v36, %v2181_v63  ;;  %v769_v63 = vld [vmem:[#allocation2 + $0xf0] sm:$0xff]  ;;  %v786_v36 = vld [vmem:[#allocation2 + $0x178] sm:$0xff] }
 0xe0b   :  { %1110 = vadd.xlane.f32.xlu0 %v1109_v13  ;;  %v1148_v57 = vpack.c.bf16 %v769_v63, %v768_v53 }
 0xe0c   :  { %v1112_v21 = vsel %vm2421_vm13, %v1108_v16, 0.0 }
 0xe0d   :  { %1113 = vadd.xlane.f32.xlu1 %v1112_v21  ;;  %1602 = vmatpush3.bf16.msra.mxu0 %v1148_v57 }
 0xe0e   :  { %1603 = vmatprep.subr.bf16.mxu0 %v1771_v9 }
 0xe11   :  { %1604 = vmatpush3.bf16.msra.mxu0 %v1149_v27 }
 0xe12   :  { %1609 = vmatprep.subr.bf16.mxu0 %v1771_v9 }
 0xe98   :  { %v1111_v22 = vpop.xlane.xlu0 %1110 }
 0xe99   :  { %v1115_v23 = vmul.f32 0.03125, %v1111_v22 }
 0xe9a   :  { %v1114_v28 = vpop.xlane.xlu1 %1113 }
 0xe9b   :  { %v1117_v29 = vsub.f32 %v1107_v40, %v1115_v23  ;;  %v1116_v41 = vmul.f32 0.03125, %v1114_v28  ;;  %v787_v40 = vld [vmem:[#allocation2 + $0x180] sm:$0xff] }
 0xe9c   :  { %v1204_v13 = vpack.c.bf16 %v787_v40, %v786_v36 }
 0xe9d   :  { %v1118_v42 = vsub.f32 %v1108_v16, %v1116_v41  ;;  %v1119_v51 = vmul.f32 %v1117_v29, %v1117_v29 }
 0xe9f   :  { %v1121_v35 = vsel %vm2422_vm2, %v1119_v51, 0.0  ;;  %v1120_v37 = vmul.f32 %v1118_v42, %v1118_v42 }
 0xea0   :  { %1122 = vadd.xlane.f32.xlu0 %v1121_v35 }
 0xea1   :  { %v1124_v31 = vsel %vm2423_vm15, %v1120_v37, 0.0 }
 0xea4   :  { %1125 = vadd.xlane.f32.xlu0 %v1124_v31 }
 0xf2d   :  { %v1123_v1 = vpop.xlane.xlu0 %1122 }
 0xf2e   :  { %v1127_v3 = vmul.f32 0.03125, %v1123_v1 }
 0xf30   :  { %v1129_v49 = vadd.f32 1e-05, %v1127_v3 }
 0xf31   :  { %v1126_v5 = vpop.xlane.xlu0 %1125 }
 0xf32   :  { %1711 = vrsqrt.f32 %v1129_v49  ;;  %v1128_v44 = vmul.f32 0.03125, %v1126_v5 }
 0xf34   :  { %v1130_v32 = vadd.f32 1e-05, %v1128_v44 }
 0xf36   :  { %1713 = vrsqrt.f32 %v1130_v32 }
 0xf3c   :  { %v1712_v12 = vpop.eup %1711 }
 0xf3d   :  { %v1133_v38 = vmul.f32 %v1712_v12, %v1117_v29 }
 0xf3f   :  { %v1139_v45 = vmul.f32 %v1138_v20, %v1133_v38  ;;  %v1287_v38 = vld [vmem:[#allocation2 + $0x1e8] sm:$0xff] }
 0xf40   :  { %v1714_v8 = vpop.eup %1713 }
 0xf41   :  { %v1134_v54 = vmul.f32 %v1714_v8, %v1118_v42  ;;  %v1145_v62 = vadd.f32 %v1144_v2, %v1139_v45  ;;  %v1288_v45 = vld [vmem:[#allocation2 + $0x1f0] sm:$0xff] }
 0xf43   :  { %v1140_v55 = vmul.f32 %v1138_v20, %v1134_v54  ;;  %v1286_v20 = vld [vmem:[#allocation2 + $0x1e0] sm:$0xff]  ;;  %v1289_v54 = vld [vmem:[#allocation2 + $0x1f8] sm:$0xff] }
 0xf44   :  { %v1292_v8 = vpack.c.bf16 %v1287_v38, %v1286_v20 }
 0xf45   :  { %v1146_v6 = vadd.f32 %v1144_v2, %v1140_v55  ;;  %v1293_v2 = vpack.c.bf16 %v1289_v54, %v1288_v45 }
 0xf46   :  { %1630 = vmatpush3.bf16.msra.mxu1 %v1292_v8 }
 0xf47   :  { %v1147_v48 = vpack.c.bf16 %v1146_v6, %v1145_v62  ;;  %1631 = vmatprep.subr.bf16.mxu1 %v1771_v9 }
 0xf49   :  { %1606 = vmatmul.mubr.msk.bf16.vlgmr.msra.gmra.mrb[20].mxu0 %vm2424_vm1, %v1147_v48 }
 0xf4a   :  { %1610 = vmatpush3.bf16.msra.mxu0 %v1197_v7  ;;  %1625 = vmatprep.mubr.msk.bf16.mxu0 %vm2393_vm4, %v1771_v9  ;;  %vm2425_vm4 = vmmov %vm2424_vm1 }
 0xf4b   :  { %1611 = vmatprep.subr.bf16.mxu0 %v1771_v9  ;;  %1632 = vmatpush3.bf16.msra.mxu1 %v1293_v2 }
 0xf4e   :  { %1612 = vmatpush3.bf16.msra.mxu0 %v1198_v60 }
 0xf4f   :  { %1613 = vmatprep.subr.bf16.mxu0 %v1771_v9 }
 0xf52   :  { %1614 = vmatpush3.bf16.msra.mxu0 %v1199_v47 }
 0xf53   :  { %1615 = vmatprep.subr.bf16.mxu0 %v1771_v9 }
 0xf56   :  { %1616 = vmatpush3.bf16.msra.mxu0 %v1200_v17 }
 0xf57   :  { %1617 = vmatprep.subr.bf16.mxu0 %v1771_v9 }
 0xf5a   :  { %1618 = vmatpush3.bf16.msra.mxu0 %v1201_v11 }
 0xf5b   :  { %1619 = vmatprep.subr.bf16.mxu0 %v1771_v9 }
 0xf5e   :  { %1620 = vmatpush3.bf16.msra.mxu0 %v1202_v19 }
 0xf5f   :  { %1621 = vmatprep.subr.bf16.mxu0 %v1771_v9 }
 0xf62   :  { %1622 = vmatpush3.bf16.msra.mxu0 %v1203_v34 }
 0xf63   :  { %1623 = vmatprep.subr.bf16.mxu0 %v1771_v9  ;;  %v1283_v9 = vrot.slane %v2312_v39, %v760_v50 }
 0xf66   :  { %1624 = vmatpush3.bf16.msra.mxu0 %v1204_v13 }
0x101c   :  { %v1187_v16 = vpop.f32.mrb[20].mxu0 }
0x101d   :  { %v1607_v21 = vpop.f32.mrb[21].mxu0  ;;  %v1194_v23 = vmax.f32 %v1187_v16, 0.0 }
0x101e   :  { %v1190_v22 = vpop.f32.mrb[22].mxu0 }
0x101f   :  { %v1195_v28 = vmax.f32 %v1190_v22, 0.0  ;;  %v1608_v29 = vpop.f32.mrb[23].mxu0 }
0x1021   :  { %v1196_v41 = vpack.c.bf16 %v1195_v28, %v1194_v23 }
0x1023   :  { %1626 = vmatmul.mubr.bf16.vlgmr.msra.gmra.mrb[24].mxu0 %v1196_v41 }
0x10f6   :  { %v1239_v42 = vpop.f32.mrb[24].mxu0 }
0x10f7   :  { %v1246_v51 = vadd.f32 %v1239_v42, %v1145_v62  ;;  %v1627_v35 = vpop.f32.mrb[25].mxu0 }
0x10f8   :  { %v1242_v37 = vpop.f32.mrb[26].mxu0 }
0x10f9   :  { %v1247_v31 = vadd.f32 %v1242_v37, %v1146_v6  ;;  %v1628_v53 = vpop.f32.mrb[27].mxu0  ;;  %v1248_v63 = vsel %vm2425_vm4, %v1246_v51, 0.0 }
0x10fa   :  { %1249 = vadd.xlane.f32.xlu0 %v1248_v63 }
0x10fb   :  { %v1251_v57 = vsel %vm2426_vm0, %v1247_v31, 0.0 }
0x10fe   :  { %1252 = vadd.xlane.f32.xlu0 %v1251_v57 }
0x1187   :  { %v1250_v59 = vpop.xlane.xlu0 %1249 }
0x1188   :  { %v1254_v0 = vmul.f32 0.03125, %v1250_v59 }
0x118a   :  { %v1256_v27 = vsub.f32 %v1246_v51, %v1254_v0 }
0x118b   :  { %v1253_v1 = vpop.xlane.xlu0 %1252 }
0x118c   :  { %v1255_v3 = vmul.f32 0.03125, %v1253_v1  ;;  %v1258_v49 = vmul.f32 %v1256_v27, %v1256_v27 }
0x118e   :  { %v1257_v5 = vsub.f32 %v1247_v31, %v1255_v3  ;;  %v1260_v44 = vsel %vm2427_vm5, %v1258_v49, 0.0 }
0x118f   :  { %1261 = vadd.xlane.f32.xlu0 %v1260_v44 }
0x1190   :  { %v1259_v32 = vmul.f32 %v1257_v5, %v1257_v5 }
0x1192   :  { %v1263_v12 = vsel %vm2428_vm6, %v1259_v32, 0.0 }
0x1193   :  { %1264 = vadd.xlane.f32.xlu0 %v1263_v12 }
0x121c   :  { %v1262_v55 = vpop.xlane.xlu0 %1261 }
0x121d   :  { %v1266_v56 = vmul.f32 0.03125, %v1262_v55 }
0x121f   :  { %v1268_v61 = vadd.f32 1e-05, %v1266_v56 }
0x1220   :  { %v1265_v62 = vpop.xlane.xlu0 %1264 }
0x1221   :  { %1715 = vrsqrt.f32 %v1268_v61  ;;  %v1267_v6 = vmul.f32 0.03125, %v1265_v62 }
0x1223   :  { %v1269_v7 = vadd.f32 1e-05, %v1267_v6 }
0x1225   :  { %1717 = vrsqrt.f32 %v1269_v7 }
0x122b   :  { %v1716_v48 = vpop.eup %1715 }
0x122c   :  { %v1272_v14 = vmul.f32 %v1716_v48, %v1256_v27 }
0x122e   :  { %v1278_v52 = vmul.f32 %v1277_v15, %v1272_v14 }
0x122f   :  { %v1718_v60 = vpop.eup %1717 }
0x1230   :  { %v1273_v24 = vmul.f32 %v1718_v60, %v1257_v5  ;;  %v1284_v33 = vadd.f32 %v1283_v9, %v1278_v52 }
0x1232   :  { %v1279_v47 = vmul.f32 %v1277_v15, %v1273_v24 }
0x1234   :  { %v1285_v58 = vadd.f32 %v1283_v9, %v1279_v47 }
0x1236   :  { %v1291_v17 = vpack.c.bf16 %v1285_v58, %v1284_v33 }
0x1238   :  { %1634 = vmatmul.mubr.msk.bf16.vlgmr.msra.gmra.mrb[24].mxu1 %vm2429_vm7, %v1291_v17 }
0x130b   :  { %v1335_v10 = vpop.f32.mrb[24].mxu1 }
0x130c   :  { %v1336_v11 = vadd.f32 %v1403_v4, %v1335_v10  ;;  %v1635_v30 = vpop.f32.mrb[25].mxu1 }
0x130d   :  { %v1338_v43 = vpop.f32.mrb[26].mxu1 }
0x130e   :  { %1342 = vst [vmem:[#allocation5] sm:$0xff] %v1336_v11  ;;  %v1339_v18 = vadd.f32 %v1403_v4, %v1338_v43  ;;  %v1636_v19 = vpop.f32.mrb[27].mxu1 }
0x1310   :  { %1343 = vst [vmem:[#allocation5 + $0x8] sm:$0xff] %v1339_v18 }
0x1311   :  { %1752 = shalt.err (!%p1749_p12)
}
0x1312   :  { %s1753_s7 = scalar_lea.hbm %s2359_s2, 256 }
0x1313   :  { %p1754_p13 = scmp.ne.s32.totalorder %s2359_s2, %s1753_s7  ;;  %p1757_p0 = scmp.lt.u32.totalorder %s1753_s7, %s2359_s2 }
0x1315   :  { %p1759_p1 = pnand %p1757_p0, %p1754_p13 }
0x1317   :  { %1762 = shalt.err (!%p1759_p1)
}
0x1318   :  { %1355 = dma.vmem_to_hbm [thread:$0]  %s1350_s3, 256, %s2359_s2, [#allocation4], %s1768_s19, %s1768_s19, %s1769_s20  }
0x1319   :  { %1765 = dma.done.wait [#allocation4], 256  }
0x131a   :  { %1766 = vsyncadd [#allocation4], 4294967040 }
0x131b   :  { %1359 = vsyncpa [#allocation3], 1 }
0x131c   :  { %1360 = vsyncpa [#allocation4], 1 }

</bundles_post_ra>
